<compile_context>
chip_gen: v7x
topology: tpu7x:2x2x1
jax: 0.10.0
libtpu: 0.0.40
codegen_flags: <defaults>
</compile_context>

<pallas_src>
import functools

import jax
import jax.numpy as jnp
from jax.experimental import pallas as pl
from jax.experimental.pallas import tpu as pltpu


# ------------------------------ helpers ------------------------------------ #
def _rup(n, m):
    return ((n + m - 1) // m) * m


def _pad2(a, shape):
    return jnp.pad(a, [(0, s - d) for d, s in zip(a.shape, shape)])


def _pad_gate_cols(a, H, Hp):
    # a: (X, 4H) -> (X, 4Hp); gate k's H columns placed at [k*Hp, k*Hp + H).
    if Hp == H:
        return a
    blocks = [jnp.pad(a[:, k * H:(k + 1) * H], [(0, 0), (0, Hp - H)]) for k in range(4)]
    return jnp.concatenate(blocks, axis=1)


# ----------------------------- Pallas kernel ------------------------------- #
def prop_kernel(ids_ref, len_ref, embproj_ref, bg_ref, whh_ref,
                wenc_ref, benc_ref, w1_ref, b1_ref, w2_ref, b2_ref,
                out_ref, xw_ref):
    T, Bt, _ = ids_ref.shape
    Hp, G = whh_ref.shape                      # G == 4 * Hp
    Vp = embproj_ref.shape[0]
    mm_dtype = whh_ref.dtype                   # f32 or bf16 matmul operands

    # --- (1) Fused embedding lookup + LSTM input projection (hoisted) -------
    # one-hot(ids) @ (Embedding @ W_ih^T + ...) as a single lane-dense MXU call.
    ids = ids_ref[...]                                                   # (T, Bt, 1) int32
    onehot = (ids == jax.lax.broadcasted_iota(jnp.int32, (T, Bt, Vp), 2)
              ).astype(mm_dtype)                                         # (T, Bt, Vp)
    xw = jnp.dot(onehot.reshape(T * Bt, Vp), embproj_ref[...],
                 preferred_element_type=jnp.float32)                     # (T*Bt, G)
    xw = xw + bg_ref[...]                                                # fold b_ih + b_hh once
    xw_ref[...] = xw.reshape(T, Bt, G)                                   # time-major scratch

    # --- (2) Loop-invariant loads hoisted ------------------------------------
    lens = len_ref[...]                                                  # (Bt, 1) int32

    # --- (3) Recurrence: only h @ W_hh on the serial critical path -----------
    def step(t, carry):
        h, c = carry
        gates = xw_ref[t] + jnp.dot(h.astype(mm_dtype), whh_ref[...],
                                    preferred_element_type=jnp.float32)  # (Bt, G)
        # Gate blocks are 128-lane aligned (H padded to Hp): no XLU rotates.
        # PyTorch LSTM gate order: i, f, g, o.
        i_g = jax.nn.sigmoid(gates[:, 0 * Hp:1 * Hp])
        f_g = jax.nn.sigmoid(gates[:, 1 * Hp:2 * Hp])
        g_g = jnp.tanh(gates[:, 2 * Hp:3 * Hp])
        o_g = jax.nn.sigmoid(gates[:, 3 * Hp:4 * Hp])
        c_new = f_g * c + i_g * g_g
        h_new = o_g * jnp.tanh(c_new)
        valid = t < lens                       # pack_padded_sequence semantics
        return jnp.where(valid, h_new, h), jnp.where(valid, c_new, c)

    init = (jnp.zeros((Bt, Hp), jnp.float32), jnp.zeros((Bt, Hp), jnp.float32))
    _, c_n = jax.lax.fori_loop(0, T, step, init,
                               unroll=True if T <= 32 else 8)

    # --- (4) Encoder tail + propNN -------------------------------------------
    # c_n.permute(1,2,0).view(B,-1) == c_n for 1 unidirectional layer.
    lat = jnp.dot(c_n.astype(mm_dtype), wenc_ref[...],
                  preferred_element_type=jnp.float32) + benc_ref[...]     # (Bt, Lp)
    z = jnp.tanh(jnp.dot(lat.astype(mm_dtype), w1_ref[...],
                         preferred_element_type=jnp.float32) + b1_ref[...])  # (Bt, D1p)
    # Final (D1 -> 1): VPU multiply + lane reduction instead of an N=1 MXU matmul.
    out_ref[...] = jnp.sum(z * w2_ref[...], axis=-1, keepdims=True) + b2_ref[...]


# --------------------------- one-time param prep ---------------------------- #
def prepare_prop_params(params, matmul_dtype=jnp.float32):
    """Transpose / pad / fuse / cast weights ONCE (not on every forward call)."""
    hi = jax.lax.Precision.HIGHEST
    emb = params["embedding"].astype(jnp.float32)          # (V, E)
    w_ih = params["w_ih"].astype(jnp.float32)              # (4H, E)
    w_hh = params["w_hh"].astype(jnp.float32)              # (4H, H)
    H = w_hh.shape[1]
    V = emb.shape[0]
    L = params["w_enc"].shape[0]
    D1 = params["w1"].shape[0]
    Hp, Lp, D1p, Vp = (_rup(x, 128) for x in (H, L, D1, V))
    G = 4 * Hp

    # Fused embedding + input projection table: (V, 4H), gate-block padded to (Vp, G).
    emb_proj = jnp.dot(emb, w_ih.T, precision=hi)
    emb_proj = _pad2(_pad_gate_cols(emb_proj, H, Hp), (Vp, G)).astype(matmul_dtype)

    b_gates = _pad_gate_cols(
        (params["b_ih"] + params["b_hh"]).reshape(1, -1).astype(jnp.float32), H, Hp)  # (1, G) f32

    w_hh_p = _pad2(_pad_gate_cols(w_hh.T, H, Hp), (Hp, G)).astype(matmul_dtype)
    w_enc_p = _pad2(params["w_enc"].T.astype(jnp.float32), (Hp, Lp)).astype(matmul_dtype)
    b_enc_p = _pad2(params["b_enc"].reshape(1, -1).astype(jnp.float32), (1, Lp))
    w1_p = _pad2(params["w1"].T.astype(jnp.float32), (Lp, D1p)).astype(matmul_dtype)
    b1_p = _pad2(params["b1"].reshape(1, -1).astype(jnp.float32), (1, D1p))
    w2_p = _pad2(params["w2"].reshape(1, -1).astype(jnp.float32), (1, D1p))   # f32 (VPU path)
    b2_p = params["b2"].reshape(1, 1).astype(jnp.float32)

    return dict(emb_proj=emb_proj, b_gates=b_gates, w_hh=w_hh_p,
                w_enc=w_enc_p, b_enc=b_enc_p, w1=w1_p, b1=b1_p,
                w2=w2_p, b2=b2_p)


# ------------------------------ forward wrapper ----------------------------- #
@functools.partial(jax.jit, static_argnames=("block_b",))
def prop_forward(prepped, x_ids, lengths, *, block_b=8):
    assert block_b % 8 == 0, "batch tile must be a sublane multiple"
    B, T = x_ids.shape
    Bt = block_b
    Bp = _rup(B, Bt)
    nb = Bp // Bt

    ids = jnp.pad(x_ids.astype(jnp.int32), ((0, Bp - B), (0, 0)))      # (Bp, T)
    ids_tm = ids.T.reshape(T, Bp, 1)                                   # tiny int transpose only
    lens = jnp.pad(lengths.astype(jnp.int32).reshape(B, 1),
                   ((0, Bp - B), (0, 0)))                              # (Bp, 1); pad rows len=0

    G = prepped["w_hh"].shape[1]
    weights = (prepped["emb_proj"], prepped["b_gates"], prepped["w_hh"],
               prepped["w_enc"], prepped["b_enc"], prepped["w1"],
               prepped["b1"], prepped["w2"], prepped["b2"])

    out = pl.pallas_call(
        prop_kernel,
        out_shape=jax.ShapeDtypeStruct((Bp, 1), jnp.float32),
        grid=(nb,),
        in_specs=[
            pl.BlockSpec((T, Bt, 1), lambda i: (0, i, 0)),   # token ids (time-major)
            pl.BlockSpec((Bt, 1), lambda i: (i, 0)),         # lengths
        ] + [pl.BlockSpec(w.shape, lambda i: (0, 0)) for w in weights],  # resident weights
        out_specs=pl.BlockSpec((Bt, 1), lambda i: (i, 0)),
        scratch_shapes=[pltpu.VMEM((T, Bt, G), jnp.float32)],           # hoisted x@W_ih + bias
        compiler_params=pltpu.CompilerParams(
            dimension_semantics=("parallel",),               # batch tiles across v7x cores
            vmem_limit_bytes=32 * 1024 * 1024),
    )(ids_tm, lens, *weights)
    return out[:B]


# --------------------------- pure-JAX reference ----------------------------- #
def prop_reference(params, x_ids, lengths):
    hi = jax.lax.Precision.HIGHEST
    emb = params["embedding"][x_ids]
    B, T, _ = emb.shape
    H = params["w_hh"].shape[1]
    h = jnp.zeros((B, H), jnp.float32)
    c = jnp.zeros((B, H), jnp.float32)
    for t in range(T):
        x_t = emb[:, t, :]
        gates = (jnp.dot(x_t, params["w_ih"].T, precision=hi)
                 + jnp.dot(h, params["w_hh"].T, precision=hi)
                 + params["b_ih"] + params["b_hh"])
        i_g = jax.nn.sigmoid(gates[:, :H])
        f_g = jax.nn.sigmoid(gates[:, H:2 * H])
        g_g = jnp.tanh(gates[:, 2 * H:3 * H])
        o_g = jax.nn.sigmoid(gates[:, 3 * H:])
        c_new = f_g * c + i_g * g_g
        h_new = o_g * jnp.tanh(c_new)
        valid = (t < lengths)[:, None]
        c = jnp.where(valid, c_new, c)
        h = jnp.where(valid, h_new, h)
    lat = jnp.dot(c, params["w_enc"].T, precision=hi) + params["b_enc"]
    z = jnp.tanh(jnp.dot(lat, params["w1"].T, precision=hi) + params["b1"])
    return jnp.dot(z, params["w2"].T, precision=hi) + params["b2"]


# ---------------------------------- main ------------------------------------ #
if __name__ == "__main__":
    # Small config consistent with the module.
    V, PAD = 20, 0          # vocab size, <pad> index
    E = 16                  # embedding_size
    H = 32                  # encoder_hidden_size (num_layers=1, unidirectional)
    L = 32                  # latent_size (== hidden_size[0] of propNN)
    D1 = 16                 # propNN hidden: hidden_size = (L, D1)
    B, T = 4, 8             # batch, max sequence length

    key = jax.random.PRNGKey(0)
    ks = jax.random.split(key, 12)
    s = 0.1
    params = {
        "embedding": (s * jax.random.normal(ks[0], (V, E), jnp.float32)).at[PAD].set(0.0),
        "w_ih":  s * jax.random.normal(ks[1], (4 * H, E), jnp.float32),
        "w_hh":  s * jax.random.normal(ks[2], (4 * H, H), jnp.float32),
        "b_ih":  s * jax.random.normal(ks[3], (4 * H,), jnp.float32),
        "b_hh":  s * jax.random.normal(ks[4], (4 * H,), jnp.float32),
        "w_enc": s * jax.random.normal(ks[5], (L, H), jnp.float32),
        "b_enc": s * jax.random.normal(ks[6], (L,), jnp.float32),
        "w1":    s * jax.random.normal(ks[7], (D1, L), jnp.float32),
        "b1":    s * jax.random.normal(ks[8], (D1,), jnp.float32),
        "w2":    s * jax.random.normal(ks[9], (1, D1), jnp.float32),
        "b2":    s * jax.random.normal(ks[10], (1,), jnp.float32),
    }

    # Deterministic inputs: sorted-descending lengths (pack_padded_sequence contract).
    lengths = jnp.array([8, 6, 5, 3], dtype=jnp.int32)
    x_ids = jax.random.randint(ks[11], (B, T), 1, V, dtype=jnp.int32)
    pos = jnp.arange(T)[None, :]
    x_ids = jnp.where(pos < lengths[:, None], x_ids, PAD)   # pad tail positions

    ref = prop_reference(params, x_ids, lengths)

    # f32 matmul operands: strict numerical check.
    prepped_f32 = prepare_prop_params(params, matmul_dtype=jnp.float32)
    out_f32 = jax.block_until_ready(prop_forward(prepped_f32, x_ids, lengths, block_b=8))
    assert out_f32.shape == (B, 1)
    assert jnp.allclose(out_f32, ref, atol=1e-4, rtol=1e-4), (out_f32, ref)

    # bf16 matmul operands (v6e/v7x MXU path; f32 state/elementwise): loose check.
    prepped_bf16 = prepare_prop_params(params, matmul_dtype=jnp.bfloat16)
    out_bf16 = jax.block_until_ready(prop_forward(prepped_bf16, x_ids, lengths, block_b=8))
    assert out_bf16.shape == (B, 1)
    assert jnp.allclose(out_bf16, ref, atol=2e-2, rtol=2e-2), (out_bf16, ref)

    print("KERNEL_OK")
</pallas_src>

<mosaic_0001>
module attributes {stable_mosaic.version = 11 : i64} {
  func.func @prop_kernel(%arg0: i32, %arg1: memref<8x8x1xi32, #tpu.memory_space<vmem>>, %arg2: memref<8x1xi32, #tpu.memory_space<vmem>>, %arg3: memref<128x512xf32, #tpu.memory_space<vmem>>, %arg4: memref<1x512xf32, #tpu.memory_space<vmem>>, %arg5: memref<128x512xf32, #tpu.memory_space<vmem>>, %arg6: memref<128x128xf32, #tpu.memory_space<vmem>>, %arg7: memref<1x128xf32, #tpu.memory_space<vmem>>, %arg8: memref<128x128xf32, #tpu.memory_space<vmem>>, %arg9: memref<1x128xf32, #tpu.memory_space<vmem>>, %arg10: memref<1x128xf32, #tpu.memory_space<vmem>>, %arg11: memref<1x1xf32, #tpu.memory_space<vmem>>, %arg12: memref<8x1xf32, #tpu.memory_space<vmem>>, %arg13: memref<8x8x512xf32, #tpu.memory_space<vmem>>) attributes {dimension_semantics = [#tpu.dimension_semantics<parallel>], iteration_bounds = array<i64: 1>, scalar_prefetch = 0 : i64, scratch_operands = 1 : i64, tpu.core_type = #tpu.core_type<tc>, window_params = [{transform_indices = @transform_0, window_bounds = array<i64: 8, 8, 1>}, {transform_indices = @transform_1, window_bounds = array<i64: 8, 1>}, {pipeline_mode = #tpu.pipeline_mode<synchronous>, transform_indices = @transform_2, window_bounds = array<i64: 128, 512>}, {pipeline_mode = #tpu.pipeline_mode<synchronous>, transform_indices = @transform_3, window_bounds = array<i64: 1, 512>}, {pipeline_mode = #tpu.pipeline_mode<synchronous>, transform_indices = @transform_4, window_bounds = array<i64: 128, 512>}, {pipeline_mode = #tpu.pipeline_mode<synchronous>, transform_indices = @transform_5, window_bounds = array<i64: 128, 128>}, {pipeline_mode = #tpu.pipeline_mode<synchronous>, transform_indices = @transform_6, window_bounds = array<i64: 1, 128>}, {pipeline_mode = #tpu.pipeline_mode<synchronous>, transform_indices = @transform_7, window_bounds = array<i64: 128, 128>}, {pipeline_mode = #tpu.pipeline_mode<synchronous>, transform_indices = @transform_8, window_bounds = array<i64: 1, 128>}, {pipeline_mode = #tpu.pipeline_mode<synchronous>, transform_indices = @transform_9, window_bounds = array<i64: 1, 128>}, {pipeline_mode = #tpu.pipeline_mode<synchronous>, transform_indices = @transform_10, window_bounds = array<i64: 1, 1>}, {transform_indices = @transform_11, window_bounds = array<i64: 8, 1>}]} {
    %c0 = arith.constant 0 : index
    %c0_0 = arith.constant 0 : index
    %c0_1 = arith.constant 0 : index
    %0 = vector.load %arg1[%c0, %c0_0, %c0_1] : memref<8x8x1xi32, #tpu.memory_space<vmem>>, vector<8x8x1xi32>
    %1 = tpu.iota {dimensions = array<i32: 2>} : vector<8x8x128xi32>
    %2 = vector.broadcast %0 : vector<8x8x1xi32> to vector<8x8x128xi32>
    %3 = arith.cmpi eq, %2, %1 : vector<8x8x128xi32>
    %4 = arith.extui %3 : vector<8x8x128xi1> to vector<8x8x128xi32>
    %5 = arith.sitofp %4 : vector<8x8x128xi32> to vector<8x8x128xf32>
    %6 = vector.shape_cast %5 : vector<8x8x128xf32> to vector<64x128xf32>
    %c0_2 = arith.constant 0 : index
    %c0_3 = arith.constant 0 : index
    %7 = vector.load %arg3[%c0_2, %c0_3] : memref<128x512xf32, #tpu.memory_space<vmem>>, vector<128x512xf32>
    %cst = arith.constant dense<0.000000e+00> : vector<64x512xf32>
    %8 = tpu.matmul %6, %7, %cst {dimension_numbers = #tpu.dot_dimension_numbers<[1], [0], [0], [1], [0, 0, 1, 1], [], []>} : vector<64x128xf32>, vector<128x512xf32>, vector<64x512xf32> -> vector<64x512xf32>
    %c0_4 = arith.constant 0 : index
    %c0_5 = arith.constant 0 : index
    %9 = vector.load %arg4[%c0_4, %c0_5] : memref<1x512xf32, #tpu.memory_space<vmem>>, vector<1x512xf32>
    %10 = vector.broadcast %9 : vector<1x512xf32> to vector<64x512xf32>
    %11 = arith.addf %8, %10 : vector<64x512xf32>
    %12 = vector.shape_cast %11 : vector<64x512xf32> to vector<8x8x512xf32>
    %c0_6 = arith.constant 0 : index
    %c0_7 = arith.constant 0 : index
    %c0_8 = arith.constant 0 : index
    %13 = vector.load %arg13[%c0_6, %c0_7, %c0_8] : memref<8x8x512xf32, #tpu.memory_space<vmem>>, vector<8x8x512xf32>
    tpu.vector_store %arg13[%c0_6, %c0_7, %c0_8], %12 {strides = array<i32>} : memref<8x8x512xf32, #tpu.memory_space<vmem>>, vector<8x8x512xf32>,
    %c0_9 = arith.constant 0 : index
    %c0_10 = arith.constant 0 : index
    %14 = vector.load %arg2[%c0_9, %c0_10] : memref<8x1xi32, #tpu.memory_space<vmem>>, vector<8x1xi32>
    %cst_11 = arith.constant 0.000000e+00 : f32
    %15 = vector.broadcast %cst_11 : f32 to vector<8x128xf32>
    %cst_12 = arith.constant 0.000000e+00 : f32
    %16 = vector.broadcast %cst_12 : f32 to vector<8x128xf32>
    %c0_i32 = arith.constant 0 : i32
    %17 = arith.index_cast %c0_i32 : i32 to index
    %c0_13 = arith.constant 0 : index
    %c0_14 = arith.constant 0 : index
    %18 = vector.load %arg13[%17, %c0_13, %c0_14] : memref<8x8x512xf32, #tpu.memory_space<vmem>>, vector<1x8x512xf32>
    %19 = vector.shape_cast %18 : vector<1x8x512xf32> to vector<8x512xf32>
    %c0_15 = arith.constant 0 : index
    %c0_16 = arith.constant 0 : index
    %20 = vector.load %arg5[%c0_15, %c0_16] : memref<128x512xf32, #tpu.memory_space<vmem>>, vector<128x512xf32>
    %cst_17 = arith.constant dense<0.000000e+00> : vector<8x512xf32>
    %21 = tpu.matmul %15, %20, %cst_17 {dimension_numbers = #tpu.dot_dimension_numbers<[1], [0], [0], [1], [0, 0, 1, 1], [], []>} : vector<8x128xf32>, vector<128x512xf32>, vector<8x512xf32> -> vector<8x512xf32>
    %22 = arith.addf %19, %21 : vector<8x512xf32>
    %23 = vector.extract_strided_slice %22 {offsets = [0, 0], sizes = [8, 128], strides = [1, 1]} : vector<8x512xf32> to vector<8x128xf32>
    %24 = arith.negf %23 : vector<8x128xf32>
    %25 = math.exp %24 : vector<8x128xf32>
    %cst_18 = arith.constant 1.000000e+00 : f32
    %26 = vector.broadcast %cst_18 : f32 to vector<8x128xf32>
    %27 = arith.addf %26, %25 : vector<8x128xf32>
    %28 = arith.divf %26, %27 : vector<8x128xf32>
    %29 = vector.extract_strided_slice %22 {offsets = [0, 128], sizes = [8, 128], strides = [1, 1]} : vector<8x512xf32> to vector<8x128xf32>
    %30 = arith.negf %29 : vector<8x128xf32>
    %31 = math.exp %30 : vector<8x128xf32>
    %cst_19 = arith.constant 1.000000e+00 : f32
    %32 = vector.broadcast %cst_19 : f32 to vector<8x128xf32>
    %33 = arith.addf %32, %31 : vector<8x128xf32>
    %34 = arith.divf %32, %33 : vector<8x128xf32>
    %35 = vector.extract_strided_slice %22 {offsets = [0, 256], sizes = [8, 128], strides = [1, 1]} : vector<8x512xf32> to vector<8x128xf32>
    %36 = math.tanh %35 : vector<8x128xf32>
    %37 = vector.extract_strided_slice %22 {offsets = [0, 384], sizes = [8, 128], strides = [1, 1]} : vector<8x512xf32> to vector<8x128xf32>
    %38 = arith.negf %37 : vector<8x128xf32>
    %39 = math.exp %38 : vector<8x128xf32>
    %cst_20 = arith.constant 1.000000e+00 : f32
    %40 = vector.broadcast %cst_20 : f32 to vector<8x128xf32>
    %41 = arith.addf %40, %39 : vector<8x128xf32>
    %42 = arith.divf %40, %41 : vector<8x128xf32>
    %43 = arith.mulf %34, %16 : vector<8x128xf32>
    %44 = arith.mulf %28, %36 : vector<8x128xf32>
    %45 = arith.addf %43, %44 : vector<8x128xf32>
    %46 = math.tanh %45 : vector<8x128xf32>
    %47 = arith.mulf %42, %46 : vector<8x128xf32>
    %48 = vector.broadcast %c0_i32 : i32 to vector<8x1xi32>
    %49 = arith.cmpi slt, %48, %14 : vector<8x1xi32>
    %50 = vector.shape_cast %49 : vector<8x1xi1> to vector<8x1xi1>
    %51 = vector.broadcast %50 : vector<8x1xi1> to vector<8x128xi1>
    %52 = arith.select %51, %47, %15 : vector<8x128xi1>, vector<8x128xf32>
    %53 = vector.shape_cast %49 : vector<8x1xi1> to vector<8x1xi1>
    %54 = vector.broadcast %53 : vector<8x1xi1> to vector<8x128xi1>
    %55 = arith.select %54, %45, %16 : vector<8x128xi1>, vector<8x128xf32>
    %c1_i32 = arith.constant 1 : i32
    %56 = arith.index_cast %c1_i32 : i32 to index
    %c0_21 = arith.constant 0 : index
    %c0_22 = arith.constant 0 : index
    %57 = vector.load %arg13[%56, %c0_21, %c0_22] : memref<8x8x512xf32, #tpu.memory_space<vmem>>, vector<1x8x512xf32>
    %58 = vector.shape_cast %57 : vector<1x8x512xf32> to vector<8x512xf32>
    %c0_23 = arith.constant 0 : index
    %c0_24 = arith.constant 0 : index
    %59 = vector.load %arg5[%c0_23, %c0_24] : memref<128x512xf32, #tpu.memory_space<vmem>>, vector<128x512xf32>
    %cst_25 = arith.constant dense<0.000000e+00> : vector<8x512xf32>
    %60 = tpu.matmul %52, %59, %cst_25 {dimension_numbers = #tpu.dot_dimension_numbers<[1], [0], [0], [1], [0, 0, 1, 1], [], []>} : vector<8x128xf32>, vector<128x512xf32>, vector<8x512xf32> -> vector<8x512xf32>
    %61 = arith.addf %58, %60 : vector<8x512xf32>
    %62 = vector.extract_strided_slice %61 {offsets = [0, 0], sizes = [8, 128], strides = [1, 1]} : vector<8x512xf32> to vector<8x128xf32>
    %63 = arith.negf %62 : vector<8x128xf32>
    %64 = math.exp %63 : vector<8x128xf32>
    %cst_26 = arith.constant 1.000000e+00 : f32
    %65 = vector.broadcast %cst_26 : f32 to vector<8x128xf32>
    %66 = arith.addf %65, %64 : vector<8x128xf32>
    %67 = arith.divf %65, %66 : vector<8x128xf32>
    %68 = vector.extract_strided_slice %61 {offsets = [0, 128], sizes = [8, 128], strides = [1, 1]} : vector<8x512xf32> to vector<8x128xf32>
    %69 = arith.negf %68 : vector<8x128xf32>
    %70 = math.exp %69 : vector<8x128xf32>
    %cst_27 = arith.constant 1.000000e+00 : f32
    %71 = vector.broadcast %cst_27 : f32 to vector<8x128xf32>
    %72 = arith.addf %71, %70 : vector<8x128xf32>
    %73 = arith.divf %71, %72 : vector<8x128xf32>
    %74 = vector.extract_strided_slice %61 {offsets = [0, 256], sizes = [8, 128], strides = [1, 1]} : vector<8x512xf32> to vector<8x128xf32>
    %75 = math.tanh %74 : vector<8x128xf32>
    %76 = vector.extract_strided_slice %61 {offsets = [0, 384], sizes = [8, 128], strides = [1, 1]} : vector<8x512xf32> to vector<8x128xf32>
    %77 = arith.negf %76 : vector<8x128xf32>
    %78 = math.exp %77 : vector<8x128xf32>
    %cst_28 = arith.constant 1.000000e+00 : f32
    %79 = vector.broadcast %cst_28 : f32 to vector<8x128xf32>
    %80 = arith.addf %79, %78 : vector<8x128xf32>
    %81 = arith.divf %79, %80 : vector<8x128xf32>
    %82 = arith.mulf %73, %55 : vector<8x128xf32>
    %83 = arith.mulf %67, %75 : vector<8x128xf32>
    %84 = arith.addf %82, %83 : vector<8x128xf32>
    %85 = math.tanh %84 : vector<8x128xf32>
    %86 = arith.mulf %81, %85 : vector<8x128xf32>
    %87 = vector.broadcast %c1_i32 : i32 to vector<8x1xi32>
    %88 = arith.cmpi slt, %87, %14 : vector<8x1xi32>
    %89 = vector.shape_cast %88 : vector<8x1xi1> to vector<8x1xi1>
    %90 = vector.broadcast %89 : vector<8x1xi1> to vector<8x128xi1>
    %91 = arith.select %90, %86, %52 : vector<8x128xi1>, vector<8x128xf32>
    %92 = vector.shape_cast %88 : vector<8x1xi1> to vector<8x1xi1>
    %93 = vector.broadcast %92 : vector<8x1xi1> to vector<8x128xi1>
    %94 = arith.select %93, %84, %55 : vector<8x128xi1>, vector<8x128xf32>
    %c2_i32 = arith.constant 2 : i32
    %95 = arith.index_cast %c2_i32 : i32 to index
    %c0_29 = arith.constant 0 : index
    %c0_30 = arith.constant 0 : index
    %96 = vector.load %arg13[%95, %c0_29, %c0_30] : memref<8x8x512xf32, #tpu.memory_space<vmem>>, vector<1x8x512xf32>
    %97 = vector.shape_cast %96 : vector<1x8x512xf32> to vector<8x512xf32>
    %c0_31 = arith.constant 0 : index
    %c0_32 = arith.constant 0 : index
    %98 = vector.load %arg5[%c0_31, %c0_32] : memref<128x512xf32, #tpu.memory_space<vmem>>, vector<128x512xf32>
    %cst_33 = arith.constant dense<0.000000e+00> : vector<8x512xf32>
    %99 = tpu.matmul %91, %98, %cst_33 {dimension_numbers = #tpu.dot_dimension_numbers<[1], [0], [0], [1], [0, 0, 1, 1], [], []>} : vector<8x128xf32>, vector<128x512xf32>, vector<8x512xf32> -> vector<8x512xf32>
    %100 = arith.addf %97, %99 : vector<8x512xf32>
    %101 = vector.extract_strided_slice %100 {offsets = [0, 0], sizes = [8, 128], strides = [1, 1]} : vector<8x512xf32> to vector<8x128xf32>
    %102 = arith.negf %101 : vector<8x128xf32>
    %103 = math.exp %102 : vector<8x128xf32>
    %cst_34 = arith.constant 1.000000e+00 : f32
    %104 = vector.broadcast %cst_34 : f32 to vector<8x128xf32>
    %105 = arith.addf %104, %103 : vector<8x128xf32>
    %106 = arith.divf %104, %105 : vector<8x128xf32>
    %107 = vector.extract_strided_slice %100 {offsets = [0, 128], sizes = [8, 128], strides = [1, 1]} : vector<8x512xf32> to vector<8x128xf32>
    %108 = arith.negf %107 : vector<8x128xf32>
    %109 = math.exp %108 : vector<8x128xf32>
    %cst_35 = arith.constant 1.000000e+00 : f32
    %110 = vector.broadcast %cst_35 : f32 to vector<8x128xf32>
    %111 = arith.addf %110, %109 : vector<8x128xf32>
    %112 = arith.divf %110, %111 : vector<8x128xf32>
    %113 = vector.extract_strided_slice %100 {offsets = [0, 256], sizes = [8, 128], strides = [1, 1]} : vector<8x512xf32> to vector<8x128xf32>
    %114 = math.tanh %113 : vector<8x128xf32>
    %115 = vector.extract_strided_slice %100 {offsets = [0, 384], sizes = [8, 128], strides = [1, 1]} : vector<8x512xf32> to vector<8x128xf32>
    %116 = arith.negf %115 : vector<8x128xf32>
    %117 = math.exp %116 : vector<8x128xf32>
    %cst_36 = arith.constant 1.000000e+00 : f32
    %118 = vector.broadcast %cst_36 : f32 to vector<8x128xf32>
    %119 = arith.addf %118, %117 : vector<8x128xf32>
    %120 = arith.divf %118, %119 : vector<8x128xf32>
    %121 = arith.mulf %112, %94 : vector<8x128xf32>
    %122 = arith.mulf %106, %114 : vector<8x128xf32>
    %123 = arith.addf %121, %122 : vector<8x128xf32>
    %124 = math.tanh %123 : vector<8x128xf32>
    %125 = arith.mulf %120, %124 : vector<8x128xf32>
    %126 = vector.broadcast %c2_i32 : i32 to vector<8x1xi32>
    %127 = arith.cmpi slt, %126, %14 : vector<8x1xi32>
    %128 = vector.shape_cast %127 : vector<8x1xi1> to vector<8x1xi1>
    %129 = vector.broadcast %128 : vector<8x1xi1> to vector<8x128xi1>
    %130 = arith.select %129, %125, %91 : vector<8x128xi1>, vector<8x128xf32>
    %131 = vector.shape_cast %127 : vector<8x1xi1> to vector<8x1xi1>
    %132 = vector.broadcast %131 : vector<8x1xi1> to vector<8x128xi1>
    %133 = arith.select %132, %123, %94 : vector<8x128xi1>, vector<8x128xf32>
    %c3_i32 = arith.constant 3 : i32
    %134 = arith.index_cast %c3_i32 : i32 to index
    %c0_37 = arith.constant 0 : index
    %c0_38 = arith.constant 0 : index
    %135 = vector.load %arg13[%134, %c0_37, %c0_38] : memref<8x8x512xf32, #tpu.memory_space<vmem>>, vector<1x8x512xf32>
    %136 = vector.shape_cast %135 : vector<1x8x512xf32> to vector<8x512xf32>
    %c0_39 = arith.constant 0 : index
    %c0_40 = arith.constant 0 : index
    %137 = vector.load %arg5[%c0_39, %c0_40] : memref<128x512xf32, #tpu.memory_space<vmem>>, vector<128x512xf32>
    %cst_41 = arith.constant dense<0.000000e+00> : vector<8x512xf32>
    %138 = tpu.matmul %130, %137, %cst_41 {dimension_numbers = #tpu.dot_dimension_numbers<[1], [0], [0], [1], [0, 0, 1, 1], [], []>} : vector<8x128xf32>, vector<128x512xf32>, vector<8x512xf32> -> vector<8x512xf32>
    %139 = arith.addf %136, %138 : vector<8x512xf32>
    %140 = vector.extract_strided_slice %139 {offsets = [0, 0], sizes = [8, 128], strides = [1, 1]} : vector<8x512xf32> to vector<8x128xf32>
    %141 = arith.negf %140 : vector<8x128xf32>
    %142 = math.exp %141 : vector<8x128xf32>
    %cst_42 = arith.constant 1.000000e+00 : f32
    %143 = vector.broadcast %cst_42 : f32 to vector<8x128xf32>
    %144 = arith.addf %143, %142 : vector<8x128xf32>
    %145 = arith.divf %143, %144 : vector<8x128xf32>
    %146 = vector.extract_strided_slice %139 {offsets = [0, 128], sizes = [8, 128], strides = [1, 1]} : vector<8x512xf32> to vector<8x128xf32>
    %147 = arith.negf %146 : vector<8x128xf32>
    %148 = math.exp %147 : vector<8x128xf32>
    %cst_43 = arith.constant 1.000000e+00 : f32
    %149 = vector.broadcast %cst_43 : f32 to vector<8x128xf32>
    %150 = arith.addf %149, %148 : vector<8x128xf32>
    %151 = arith.divf %149, %150 : vector<8x128xf32>
    %152 = vector.extract_strided_slice %139 {offsets = [0, 256], sizes = [8, 128], strides = [1, 1]} : vector<8x512xf32> to vector<8x128xf32>
    %153 = math.tanh %152 : vector<8x128xf32>
    %154 = vector.extract_strided_slice %139 {offsets = [0, 384], sizes = [8, 128], strides = [1, 1]} : vector<8x512xf32> to vector<8x128xf32>
    %155 = arith.negf %154 : vector<8x128xf32>
    %156 = math.exp %155 : vector<8x128xf32>
    %cst_44 = arith.constant 1.000000e+00 : f32
    %157 = vector.broadcast %cst_44 : f32 to vector<8x128xf32>
    %158 = arith.addf %157, %156 : vector<8x128xf32>
    %159 = arith.divf %157, %158 : vector<8x128xf32>
    %160 = arith.mulf %151, %133 : vector<8x128xf32>
    %161 = arith.mulf %145, %153 : vector<8x128xf32>
    %162 = arith.addf %160, %161 : vector<8x128xf32>
    %163 = math.tanh %162 : vector<8x128xf32>
    %164 = arith.mulf %159, %163 : vector<8x128xf32>
    %165 = vector.broadcast %c3_i32 : i32 to vector<8x1xi32>
    %166 = arith.cmpi slt, %165, %14 : vector<8x1xi32>
    %167 = vector.shape_cast %166 : vector<8x1xi1> to vector<8x1xi1>
    %168 = vector.broadcast %167 : vector<8x1xi1> to vector<8x128xi1>
    %169 = arith.select %168, %164, %130 : vector<8x128xi1>, vector<8x128xf32>
    %170 = vector.shape_cast %166 : vector<8x1xi1> to vector<8x1xi1>
    %171 = vector.broadcast %170 : vector<8x1xi1> to vector<8x128xi1>
    %172 = arith.select %171, %162, %133 : vector<8x128xi1>, vector<8x128xf32>
    %c4_i32 = arith.constant 4 : i32
    %173 = arith.index_cast %c4_i32 : i32 to index
    %c0_45 = arith.constant 0 : index
    %c0_46 = arith.constant 0 : index
    %174 = vector.load %arg13[%173, %c0_45, %c0_46] : memref<8x8x512xf32, #tpu.memory_space<vmem>>, vector<1x8x512xf32>
    %175 = vector.shape_cast %174 : vector<1x8x512xf32> to vector<8x512xf32>
    %c0_47 = arith.constant 0 : index
    %c0_48 = arith.constant 0 : index
    %176 = vector.load %arg5[%c0_47, %c0_48] : memref<128x512xf32, #tpu.memory_space<vmem>>, vector<128x512xf32>
    %cst_49 = arith.constant dense<0.000000e+00> : vector<8x512xf32>
    %177 = tpu.matmul %169, %176, %cst_49 {dimension_numbers = #tpu.dot_dimension_numbers<[1], [0], [0], [1], [0, 0, 1, 1], [], []>} : vector<8x128xf32>, vector<128x512xf32>, vector<8x512xf32> -> vector<8x512xf32>
    %178 = arith.addf %175, %177 : vector<8x512xf32>
    %179 = vector.extract_strided_slice %178 {offsets = [0, 0], sizes = [8, 128], strides = [1, 1]} : vector<8x512xf32> to vector<8x128xf32>
    %180 = arith.negf %179 : vector<8x128xf32>
    %181 = math.exp %180 : vector<8x128xf32>
    %cst_50 = arith.constant 1.000000e+00 : f32
    %182 = vector.broadcast %cst_50 : f32 to vector<8x128xf32>
    %183 = arith.addf %182, %181 : vector<8x128xf32>
    %184 = arith.divf %182, %183 : vector<8x128xf32>
    %185 = vector.extract_strided_slice %178 {offsets = [0, 128], sizes = [8, 128], strides = [1, 1]} : vector<8x512xf32> to vector<8x128xf32>
    %186 = arith.negf %185 : vector<8x128xf32>
    %187 = math.exp %186 : vector<8x128xf32>
    %cst_51 = arith.constant 1.000000e+00 : f32
    %188 = vector.broadcast %cst_51 : f32 to vector<8x128xf32>
    %189 = arith.addf %188, %187 : vector<8x128xf32>
    %190 = arith.divf %188, %189 : vector<8x128xf32>
    %191 = vector.extract_strided_slice %178 {offsets = [0, 256], sizes = [8, 128], strides = [1, 1]} : vector<8x512xf32> to vector<8x128xf32>
    %192 = math.tanh %191 : vector<8x128xf32>
    %193 = vector.extract_strided_slice %178 {offsets = [0, 384], sizes = [8, 128], strides = [1, 1]} : vector<8x512xf32> to vector<8x128xf32>
    %194 = arith.negf %193 : vector<8x128xf32>
    %195 = math.exp %194 : vector<8x128xf32>
    %cst_52 = arith.constant 1.000000e+00 : f32
    %196 = vector.broadcast %cst_52 : f32 to vector<8x128xf32>
    %197 = arith.addf %196, %195 : vector<8x128xf32>
    %198 = arith.divf %196, %197 : vector<8x128xf32>
    %199 = arith.mulf %190, %172 : vector<8x128xf32>
    %200 = arith.mulf %184, %192 : vector<8x128xf32>
    %201 = arith.addf %199, %200 : vector<8x128xf32>
    %202 = math.tanh %201 : vector<8x128xf32>
    %203 = arith.mulf %198, %202 : vector<8x128xf32>
    %204 = vector.broadcast %c4_i32 : i32 to vector<8x1xi32>
    %205 = arith.cmpi slt, %204, %14 : vector<8x1xi32>
    %206 = vector.shape_cast %205 : vector<8x1xi1> to vector<8x1xi1>
    %207 = vector.broadcast %206 : vector<8x1xi1> to vector<8x128xi1>
    %208 = arith.select %207, %203, %169 : vector<8x128xi1>, vector<8x128xf32>
    %209 = vector.shape_cast %205 : vector<8x1xi1> to vector<8x1xi1>
    %210 = vector.broadcast %209 : vector<8x1xi1> to vector<8x128xi1>
    %211 = arith.select %210, %201, %172 : vector<8x128xi1>, vector<8x128xf32>
    %c5_i32 = arith.constant 5 : i32
    %212 = arith.index_cast %c5_i32 : i32 to index
    %c0_53 = arith.constant 0 : index
    %c0_54 = arith.constant 0 : index
    %213 = vector.load %arg13[%212, %c0_53, %c0_54] : memref<8x8x512xf32, #tpu.memory_space<vmem>>, vector<1x8x512xf32>
    %214 = vector.shape_cast %213 : vector<1x8x512xf32> to vector<8x512xf32>
    %c0_55 = arith.constant 0 : index
    %c0_56 = arith.constant 0 : index
    %215 = vector.load %arg5[%c0_55, %c0_56] : memref<128x512xf32, #tpu.memory_space<vmem>>, vector<128x512xf32>
    %cst_57 = arith.constant dense<0.000000e+00> : vector<8x512xf32>
    %216 = tpu.matmul %208, %215, %cst_57 {dimension_numbers = #tpu.dot_dimension_numbers<[1], [0], [0], [1], [0, 0, 1, 1], [], []>} : vector<8x128xf32>, vector<128x512xf32>, vector<8x512xf32> -> vector<8x512xf32>
    %217 = arith.addf %214, %216 : vector<8x512xf32>
    %218 = vector.extract_strided_slice %217 {offsets = [0, 0], sizes = [8, 128], strides = [1, 1]} : vector<8x512xf32> to vector<8x128xf32>
    %219 = arith.negf %218 : vector<8x128xf32>
    %220 = math.exp %219 : vector<8x128xf32>
    %cst_58 = arith.constant 1.000000e+00 : f32
    %221 = vector.broadcast %cst_58 : f32 to vector<8x128xf32>
    %222 = arith.addf %221, %220 : vector<8x128xf32>
    %223 = arith.divf %221, %222 : vector<8x128xf32>
    %224 = vector.extract_strided_slice %217 {offsets = [0, 128], sizes = [8, 128], strides = [1, 1]} : vector<8x512xf32> to vector<8x128xf32>
    %225 = arith.negf %224 : vector<8x128xf32>
    %226 = math.exp %225 : vector<8x128xf32>
    %cst_59 = arith.constant 1.000000e+00 : f32
    %227 = vector.broadcast %cst_59 : f32 to vector<8x128xf32>
    %228 = arith.addf %227, %226 : vector<8x128xf32>
    %229 = arith.divf %227, %228 : vector<8x128xf32>
    %230 = vector.extract_strided_slice %217 {offsets = [0, 256], sizes = [8, 128], strides = [1, 1]} : vector<8x512xf32> to vector<8x128xf32>
    %231 = math.tanh %230 : vector<8x128xf32>
    %232 = vector.extract_strided_slice %217 {offsets = [0, 384], sizes = [8, 128], strides = [1, 1]} : vector<8x512xf32> to vector<8x128xf32>
    %233 = arith.negf %232 : vector<8x128xf32>
    %234 = math.exp %233 : vector<8x128xf32>
    %cst_60 = arith.constant 1.000000e+00 : f32
    %235 = vector.broadcast %cst_60 : f32 to vector<8x128xf32>
    %236 = arith.addf %235, %234 : vector<8x128xf32>
    %237 = arith.divf %235, %236 : vector<8x128xf32>
    %238 = arith.mulf %229, %211 : vector<8x128xf32>
    %239 = arith.mulf %223, %231 : vector<8x128xf32>
    %240 = arith.addf %238, %239 : vector<8x128xf32>
    %241 = math.tanh %240 : vector<8x128xf32>
    %242 = arith.mulf %237, %241 : vector<8x128xf32>
    %243 = vector.broadcast %c5_i32 : i32 to vector<8x1xi32>
    %244 = arith.cmpi slt, %243, %14 : vector<8x1xi32>
    %245 = vector.shape_cast %244 : vector<8x1xi1> to vector<8x1xi1>
    %246 = vector.broadcast %245 : vector<8x1xi1> to vector<8x128xi1>
    %247 = arith.select %246, %242, %208 : vector<8x128xi1>, vector<8x128xf32>
    %248 = vector.shape_cast %244 : vector<8x1xi1> to vector<8x1xi1>
    %249 = vector.broadcast %248 : vector<8x1xi1> to vector<8x128xi1>
    %250 = arith.select %249, %240, %211 : vector<8x128xi1>, vector<8x128xf32>
    %c6_i32 = arith.constant 6 : i32
    %251 = arith.index_cast %c6_i32 : i32 to index
    %c0_61 = arith.constant 0 : index
    %c0_62 = arith.constant 0 : index
    %252 = vector.load %arg13[%251, %c0_61, %c0_62] : memref<8x8x512xf32, #tpu.memory_space<vmem>>, vector<1x8x512xf32>
    %253 = vector.shape_cast %252 : vector<1x8x512xf32> to vector<8x512xf32>
    %c0_63 = arith.constant 0 : index
    %c0_64 = arith.constant 0 : index
    %254 = vector.load %arg5[%c0_63, %c0_64] : memref<128x512xf32, #tpu.memory_space<vmem>>, vector<128x512xf32>
    %cst_65 = arith.constant dense<0.000000e+00> : vector<8x512xf32>
    %255 = tpu.matmul %247, %254, %cst_65 {dimension_numbers = #tpu.dot_dimension_numbers<[1], [0], [0], [1], [0, 0, 1, 1], [], []>} : vector<8x128xf32>, vector<128x512xf32>, vector<8x512xf32> -> vector<8x512xf32>
    %256 = arith.addf %253, %255 : vector<8x512xf32>
    %257 = vector.extract_strided_slice %256 {offsets = [0, 0], sizes = [8, 128], strides = [1, 1]} : vector<8x512xf32> to vector<8x128xf32>
    %258 = arith.negf %257 : vector<8x128xf32>
    %259 = math.exp %258 : vector<8x128xf32>
    %cst_66 = arith.constant 1.000000e+00 : f32
    %260 = vector.broadcast %cst_66 : f32 to vector<8x128xf32>
    %261 = arith.addf %260, %259 : vector<8x128xf32>
    %262 = arith.divf %260, %261 : vector<8x128xf32>
    %263 = vector.extract_strided_slice %256 {offsets = [0, 128], sizes = [8, 128], strides = [1, 1]} : vector<8x512xf32> to vector<8x128xf32>
    %264 = arith.negf %263 : vector<8x128xf32>
    %265 = math.exp %264 : vector<8x128xf32>
    %cst_67 = arith.constant 1.000000e+00 : f32
    %266 = vector.broadcast %cst_67 : f32 to vector<8x128xf32>
    %267 = arith.addf %266, %265 : vector<8x128xf32>
    %268 = arith.divf %266, %267 : vector<8x128xf32>
    %269 = vector.extract_strided_slice %256 {offsets = [0, 256], sizes = [8, 128], strides = [1, 1]} : vector<8x512xf32> to vector<8x128xf32>
    %270 = math.tanh %269 : vector<8x128xf32>
    %271 = vector.extract_strided_slice %256 {offsets = [0, 384], sizes = [8, 128], strides = [1, 1]} : vector<8x512xf32> to vector<8x128xf32>
    %272 = arith.negf %271 : vector<8x128xf32>
    %273 = math.exp %272 : vector<8x128xf32>
    %cst_68 = arith.constant 1.000000e+00 : f32
    %274 = vector.broadcast %cst_68 : f32 to vector<8x128xf32>
    %275 = arith.addf %274, %273 : vector<8x128xf32>
    %276 = arith.divf %274, %275 : vector<8x128xf32>
    %277 = arith.mulf %268, %250 : vector<8x128xf32>
    %278 = arith.mulf %262, %270 : vector<8x128xf32>
    %279 = arith.addf %277, %278 : vector<8x128xf32>
    %280 = math.tanh %279 : vector<8x128xf32>
    %281 = arith.mulf %276, %280 : vector<8x128xf32>
    %282 = vector.broadcast %c6_i32 : i32 to vector<8x1xi32>
    %283 = arith.cmpi slt, %282, %14 : vector<8x1xi32>
    %284 = vector.shape_cast %283 : vector<8x1xi1> to vector<8x1xi1>
    %285 = vector.broadcast %284 : vector<8x1xi1> to vector<8x128xi1>
    %286 = arith.select %285, %281, %247 : vector<8x128xi1>, vector<8x128xf32>
    %287 = vector.shape_cast %283 : vector<8x1xi1> to vector<8x1xi1>
    %288 = vector.broadcast %287 : vector<8x1xi1> to vector<8x128xi1>
    %289 = arith.select %288, %279, %250 : vector<8x128xi1>, vector<8x128xf32>
    %c7_i32 = arith.constant 7 : i32
    %290 = arith.index_cast %c7_i32 : i32 to index
    %c0_69 = arith.constant 0 : index
    %c0_70 = arith.constant 0 : index
    %291 = vector.load %arg13[%290, %c0_69, %c0_70] : memref<8x8x512xf32, #tpu.memory_space<vmem>>, vector<1x8x512xf32>
    %292 = vector.shape_cast %291 : vector<1x8x512xf32> to vector<8x512xf32>
    %c0_71 = arith.constant 0 : index
    %c0_72 = arith.constant 0 : index
    %293 = vector.load %arg5[%c0_71, %c0_72] : memref<128x512xf32, #tpu.memory_space<vmem>>, vector<128x512xf32>
    %cst_73 = arith.constant dense<0.000000e+00> : vector<8x512xf32>
    %294 = tpu.matmul %286, %293, %cst_73 {dimension_numbers = #tpu.dot_dimension_numbers<[1], [0], [0], [1], [0, 0, 1, 1], [], []>} : vector<8x128xf32>, vector<128x512xf32>, vector<8x512xf32> -> vector<8x512xf32>
    %295 = arith.addf %292, %294 : vector<8x512xf32>
    %296 = vector.extract_strided_slice %295 {offsets = [0, 0], sizes = [8, 128], strides = [1, 1]} : vector<8x512xf32> to vector<8x128xf32>
    %297 = arith.negf %296 : vector<8x128xf32>
    %298 = math.exp %297 : vector<8x128xf32>
    %cst_74 = arith.constant 1.000000e+00 : f32
    %299 = vector.broadcast %cst_74 : f32 to vector<8x128xf32>
    %300 = arith.addf %299, %298 : vector<8x128xf32>
    %301 = arith.divf %299, %300 : vector<8x128xf32>
    %302 = vector.extract_strided_slice %295 {offsets = [0, 128], sizes = [8, 128], strides = [1, 1]} : vector<8x512xf32> to vector<8x128xf32>
    %303 = arith.negf %302 : vector<8x128xf32>
    %304 = math.exp %303 : vector<8x128xf32>
    %cst_75 = arith.constant 1.000000e+00 : f32
    %305 = vector.broadcast %cst_75 : f32 to vector<8x128xf32>
    %306 = arith.addf %305, %304 : vector<8x128xf32>
    %307 = arith.divf %305, %306 : vector<8x128xf32>
    %308 = vector.extract_strided_slice %295 {offsets = [0, 256], sizes = [8, 128], strides = [1, 1]} : vector<8x512xf32> to vector<8x128xf32>
    %309 = math.tanh %308 : vector<8x128xf32>
    %310 = vector.extract_strided_slice %295 {offsets = [0, 384], sizes = [8, 128], strides = [1, 1]} : vector<8x512xf32> to vector<8x128xf32>
    %311 = arith.negf %310 : vector<8x128xf32>
    %312 = math.exp %311 : vector<8x128xf32>
    %cst_76 = arith.constant 1.000000e+00 : f32
    %313 = vector.broadcast %cst_76 : f32 to vector<8x128xf32>
    %314 = arith.addf %313, %312 : vector<8x128xf32>
    %315 = arith.divf %313, %314 : vector<8x128xf32>
    %316 = arith.mulf %307, %289 : vector<8x128xf32>
    %317 = arith.mulf %301, %309 : vector<8x128xf32>
    %318 = arith.addf %316, %317 : vector<8x128xf32>
    %319 = math.tanh %318 : vector<8x128xf32>
    %320 = arith.mulf %315, %319 : vector<8x128xf32>
    %321 = vector.broadcast %c7_i32 : i32 to vector<8x1xi32>
    %322 = arith.cmpi slt, %321, %14 : vector<8x1xi32>
    %323 = vector.shape_cast %322 : vector<8x1xi1> to vector<8x1xi1>
    %324 = vector.broadcast %323 : vector<8x1xi1> to vector<8x128xi1>
    %325 = arith.select %324, %320, %286 : vector<8x128xi1>, vector<8x128xf32>
    %326 = vector.shape_cast %322 : vector<8x1xi1> to vector<8x1xi1>
    %327 = vector.broadcast %326 : vector<8x1xi1> to vector<8x128xi1>
    %328 = arith.select %327, %318, %289 : vector<8x128xi1>, vector<8x128xf32>
    %c8_i32 = arith.constant 8 : i32
    %c0_77 = arith.constant 0 : index
    %c0_78 = arith.constant 0 : index
    %329 = vector.load %arg6[%c0_77, %c0_78] : memref<128x128xf32, #tpu.memory_space<vmem>>, vector<128x128xf32>
    %cst_79 = arith.constant dense<0.000000e+00> : vector<8x128xf32>
    %330 = tpu.matmul %328, %329, %cst_79 {dimension_numbers = #tpu.dot_dimension_numbers<[1], [0], [0], [1], [0, 0, 1, 1], [], []>} : vector<8x128xf32>, vector<128x128xf32>, vector<8x128xf32> -> vector<8x128xf32>
    %c0_80 = arith.constant 0 : index
    %c0_81 = arith.constant 0 : index
    %331 = vector.load %arg7[%c0_80, %c0_81] : memref<1x128xf32, #tpu.memory_space<vmem>>, vector<1x128xf32>
    %332 = vector.broadcast %331 : vector<1x128xf32> to vector<8x128xf32>
    %333 = arith.addf %330, %332 : vector<8x128xf32>
    %c0_82 = arith.constant 0 : index
    %c0_83 = arith.constant 0 : index
    %334 = vector.load %arg8[%c0_82, %c0_83] : memref<128x128xf32, #tpu.memory_space<vmem>>, vector<128x128xf32>
    %cst_84 = arith.constant dense<0.000000e+00> : vector<8x128xf32>
    %335 = tpu.matmul %333, %334, %cst_84 {dimension_numbers = #tpu.dot_dimension_numbers<[1], [0], [0], [1], [0, 0, 1, 1], [], []>} : vector<8x128xf32>, vector<128x128xf32>, vector<8x128xf32> -> vector<8x128xf32>
    %c0_85 = arith.constant 0 : index
    %c0_86 = arith.constant 0 : index
    %336 = vector.load %arg9[%c0_85, %c0_86] : memref<1x128xf32, #tpu.memory_space<vmem>>, vector<1x128xf32>
    %337 = vector.broadcast %336 : vector<1x128xf32> to vector<8x128xf32>
    %338 = arith.addf %335, %337 : vector<8x128xf32>
    %339 = math.tanh %338 : vector<8x128xf32>
    %c0_87 = arith.constant 0 : index
    %c0_88 = arith.constant 0 : index
    %340 = vector.load %arg10[%c0_87, %c0_88] : memref<1x128xf32, #tpu.memory_space<vmem>>, vector<1x128xf32>
    %341 = vector.broadcast %340 : vector<1x128xf32> to vector<8x128xf32>
    %342 = arith.mulf %339, %341 : vector<8x128xf32>
    %cst_89 = arith.constant dense<0.000000e+00> : vector<8xf32>
    %343 = vector.multi_reduction <add>, %342, %cst_89 [1] : vector<8x128xf32> to vector<8xf32>
    %344 = vector.shape_cast %343 : vector<8xf32> to vector<8x1xf32>
    %c0_90 = arith.constant 0 : index
    %c0_91 = arith.constant 0 : index
    %345 = vector.load %arg11[%c0_90, %c0_91] : memref<1x1xf32, #tpu.memory_space<vmem>>, vector<1x1xf32>
    %346 = vector.broadcast %345 : vector<1x1xf32> to vector<8x1xf32>
    %347 = arith.addf %344, %346 : vector<8x1xf32>
    %c0_92 = arith.constant 0 : index
    %c0_93 = arith.constant 0 : index
    %348 = vector.load %arg12[%c0_92, %c0_93] : memref<8x1xf32, #tpu.memory_space<vmem>>, vector<8x1xf32>
    tpu.vector_store %arg12[%c0_92, %c0_93], %347 {strides = array<i32>} : memref<8x1xf32, #tpu.memory_space<vmem>>, vector<8x1xf32>,
    return
  }
  func.func @transform_0(%arg0: i32) -> (i32, i32, i32) {
    %c0_i32 = arith.constant 0 : i32
    %c0_i32_0 = arith.constant 0 : i32
    %c0_i32_1 = arith.constant 0 : i32
    return %c0_i32, %arg0, %c0_i32_0 : i32, i32, i32
  }
  func.func @transform_1(%arg0: i32) -> (i32, i32) {
    %c0_i32 = arith.constant 0 : i32
    %c0_i32_0 = arith.constant 0 : i32
    return %arg0, %c0_i32 : i32, i32
  }
  func.func @transform_2(%arg0: i32) -> (i32, i32) {
    %c0_i32 = arith.constant 0 : i32
    %c0_i32_0 = arith.constant 0 : i32
    %c0_i32_1 = arith.constant 0 : i32
    return %c0_i32, %c0_i32_0 : i32, i32
  }
  func.func @transform_3(%arg0: i32) -> (i32, i32) {
    %c0_i32 = arith.constant 0 : i32
    %c0_i32_0 = arith.constant 0 : i32
    %c0_i32_1 = arith.constant 0 : i32
    return %c0_i32, %c0_i32_0 : i32, i32
  }
  func.func @transform_4(%arg0: i32) -> (i32, i32) {
    %c0_i32 = arith.constant 0 : i32
    %c0_i32_0 = arith.constant 0 : i32
    %c0_i32_1 = arith.constant 0 : i32
    return %c0_i32, %c0_i32_0 : i32, i32
  }
  func.func @transform_5(%arg0: i32) -> (i32, i32) {
    %c0_i32 = arith.constant 0 : i32
    %c0_i32_0 = arith.constant 0 : i32
    %c0_i32_1 = arith.constant 0 : i32
    return %c0_i32, %c0_i32_0 : i32, i32
  }
  func.func @transform_6(%arg0: i32) -> (i32, i32) {
    %c0_i32 = arith.constant 0 : i32
    %c0_i32_0 = arith.constant 0 : i32
    %c0_i32_1 = arith.constant 0 : i32
    return %c0_i32, %c0_i32_0 : i32, i32
  }
  func.func @transform_7(%arg0: i32) -> (i32, i32) {
    %c0_i32 = arith.constant 0 : i32
    %c0_i32_0 = arith.constant 0 : i32
    %c0_i32_1 = arith.constant 0 : i32
    return %c0_i32, %c0_i32_0 : i32, i32
  }
  func.func @transform_8(%arg0: i32) -> (i32, i32) {
    %c0_i32 = arith.constant 0 : i32
    %c0_i32_0 = arith.constant 0 : i32
    %c0_i32_1 = arith.constant 0 : i32
    return %c0_i32, %c0_i32_0 : i32, i32
  }
  func.func @transform_9(%arg0: i32) -> (i32, i32) {
    %c0_i32 = arith.constant 0 : i32
    %c0_i32_0 = arith.constant 0 : i32
    %c0_i32_1 = arith.constant 0 : i32
    return %c0_i32, %c0_i32_0 : i32, i32
  }
  func.func @transform_10(%arg0: i32) -> (i32, i32) {
    %c0_i32 = arith.constant 0 : i32
    %c0_i32_0 = arith.constant 0 : i32
    %c0_i32_1 = arith.constant 0 : i32
    return %c0_i32, %c0_i32_0 : i32, i32
  }
  func.func @transform_11(%arg0: i32) -> (i32, i32) {
    %c0_i32 = arith.constant 0 : i32
    %c0_i32_0 = arith.constant 0 : i32
    return %arg0, %c0_i32 : i32, i32
  }
}

</mosaic_0001>

<bundles_post_ra>
// kernel: prop_forward.1
= control target key start
LH: loop header
LB: loop body
LE: loop exit
PB: predicated region body
PF: predicated region fallthrough
CT: control target
= control target key end

     0   :  { %s4007_s0 = inlined_call_operand.vmem [shape: s32[8,8,1], index: 0, kind: input, shape index: {}]   ;;  %s4008_s1 = inlined_call_operand.vmem [shape: s32[8,1], index: 1, kind: input, shape index: {}]   ;;  %s4009_s2 = inlined_call_operand.hbm [shape: f32[128,512], index: 2, kind: input, shape index: {}]   ;;  %s4010_s3 = inlined_call_operand.vmem [shape: f32[1,512], index: 3, kind: input, shape index: {}]   ;;  %s4011_s4 = inlined_call_operand.hbm [shape: f32[128,512], index: 4, kind: input, shape index: {}]   ;;  %s4012_s5 = inlined_call_operand.vmem [shape: f32[128,128], index: 5, kind: input, shape index: {}]   ;;  %s4013_s6 = inlined_call_operand.vmem [shape: f32[1,128], index: 6, kind: input, shape index: {}]   ;;  %s4014_s7 = inlined_call_operand.hbm [shape: f32[128,128], index: 7, kind: input, shape index: {}]   ;;  %s4015_s8 = inlined_call_operand.vmem [shape: f32[1,128], index: 8, kind: input, shape index: {}]   ;;  %s4016_s9 = inlined_call_operand.vmem [shape: f32[1,128], index: 9, kind: input, shape index: {}]   ;;  %s4017_s10 = inlined_call_operand.<no memory space> [shape: f32[1,1], index: 10, kind: input, shape index: {}]   ;;  %s4018_s11 = inlined_call_operand.vmem [shape: f32[8,1], index: 11, kind: output, shape index: {}]  }
   0x1   :  { %v16_v0 = vstv %s4017_s10 }
   0x2   :  { %17 = vst [vmem:[#allocation3] sm:$0x1] %v16_v0 }
   0x3   :  { %18 = vsyncpa [#allocation5], 0 }
   0x4   :  { %19 = vsyncpa [#allocation7], 0  ;;  %s3264_s19 = smov [#allocation6]   ;;  %s3265_s21 = smov [#allocation4]  }
   0x5   :  { %s43_s20 = sshll.u32 %s3264_s19, 4  ;;  %s29_s22 = sshll.u32 %s3265_s21, 4  ;;  %s44_s20 = int_to_ptr.vmem [resolvable:$true] %s43_s20  ;;  %s3339_s22 = int_to_ptr.vmem [resolvable:$true] %s29_s22 }
   0x6   :  { %s3194_s25 = scalar_lea.hbm %s4011_s4, 8192 }
   0x7   :  { %p3195_p0 = scmp.ne.s32.totalorder %s4011_s4, %s3194_s25  ;;  %p3198_p1 = scmp.lt.u32.totalorder %s3194_s25, %s4011_s4 }
   0x9   :  { %p3200_p2 = pnand %p3198_p1, %p3195_p0 }
   0xb   :  { %3203 = shalt.err (!%p3200_p2)
}
   0xc   :  { %s3204_s29 = scalar_lea.vmem %s44_s20, 8192  ;;  %p3209_p4 = scmp.lt.s32.totalorder %s44_s20, %s44_s20 }
   0xd   :  { %p3205_p3 = scmp.ne.s32.totalorder %s44_s20, %s3204_s29  ;;  %p3210_p5 = scmp.lt.s32.totalorder %s3204_s29, %s3204_s29 }
   0xf   :  { %p3211_p6 = por %p3210_p5, %p3209_p4 }
  0x11   :  { %p3212_p7 = pnand %p3211_p6, %p3205_p3 }
  0x13   :  { %3215 = shalt.err (!%p3212_p7)
}
  0x14   :  { %s3266_s30 = smov 512   ;;  %s3267_s12 = smov 32  }
  0x15   :  { %49 = dma.hbm_to_vmem [thread:$0]  %s4011_s4, 8192, %s44_s20, [#allocation7], %s3266_s30, %s3266_s30, %s3267_s12  }
  0x16   :  { %s3216_s17 = scalar_lea.hbm %s4009_s2, 8192 }
  0x17   :  { %p3217_p8 = scmp.ne.s32.totalorder %s4009_s2, %s3216_s17  ;;  %p3220_p9 = scmp.lt.u32.totalorder %s3216_s17, %s4009_s2 }
  0x19   :  { %p3222_p10 = pnand %p3220_p9, %p3217_p8 }
  0x1b   :  { %3225 = shalt.err (!%p3222_p10)
}
  0x1c   :  { %s3226_s24 = scalar_lea.vmem %s3339_s22, 8192  ;;  %p3231_p12 = scmp.lt.s32.totalorder %s3339_s22, %s3339_s22 }
  0x1d   :  { %p3227_p11 = scmp.ne.s32.totalorder %s3339_s22, %s3226_s24  ;;  %p3232_p13 = scmp.lt.s32.totalorder %s3226_s24, %s3226_s24 }
  0x1f   :  { %p3233_p0 = por %p3232_p13, %p3231_p12 }
  0x21   :  { %p3234_p1 = pnand %p3233_p0, %p3227_p11 }
  0x23   :  { %3237 = shalt.err (!%p3234_p1)
}
  0x24   :  { %35 = dma.hbm_to_vmem [thread:$0]  %s4009_s2, 8192, %s3339_s22, [#allocation5], %s3266_s30, %s3266_s30, %s3267_s12  }
  0x25   :  { %s3268_s25 = smov [#allocation8]   ;;  %s3238_s10 = scalar_lea.hbm %s4014_s7, 2048 }
  0x26   :  { %s59_s26 = sshll.u32 %s3268_s25, 4  ;;  %p3239_p2 = scmp.ne.s32.totalorder %s4014_s7, %s3238_s10  ;;  %s60_s26 = int_to_ptr.vmem [resolvable:$true] %s59_s26 }
  0x27   :  { %p3242_p3 = scmp.lt.u32.totalorder %s3238_s10, %s4014_s7 }
  0x29   :  { %p3244_p4 = pnand %p3242_p3, %p3239_p2 }
  0x2b   :  { %3247 = shalt.err (!%p3244_p4)
}
  0x2c   :  { %s3248_s16 = scalar_lea.vmem %s60_s26, 2048  ;;  %p3253_p6 = scmp.lt.s32.totalorder %s60_s26, %s60_s26 }
  0x2d   :  { %p3249_p5 = scmp.ne.s32.totalorder %s60_s26, %s3248_s16  ;;  %p3254_p7 = scmp.lt.s32.totalorder %s3248_s16, %s3248_s16 }
  0x2f   :  { %p3255_p8 = por %p3254_p7, %p3253_p6 }
  0x31   :  { %p3256_p9 = pnand %p3255_p8, %p3249_p5 }
  0x33   :  { %3259 = shalt.err (!%p3256_p9)
}
  0x34   :  { %s3269_s2 = smov 128   ;;  %s3270_s22 = smov 8  }
  0x35   :  { %65 = dma.hbm_to_vmem [thread:$0]  %s4014_s7, 2048, %s60_s26, [#allocation7], %s3269_s2, %s3269_s2, %s3270_s22  }
  0x36   :  { %3260 = dma.done.wait [#allocation5], 8192  }
  0x37   :  { %3261 = vsyncadd [#allocation5], 4294959104 }
  0x38   :  { %3262 = dma.done.wait [#allocation7], 10240  }
  0x39   :  { %3263 = vsyncadd [#allocation7], 4294957056  ;;  %v3271_v1 = vmov 0   ;;  %v83_v2 = vld [vmem:[%s4007_s0 + $0x10] sm:$0xff]  ;;  %v81_v3 = vld [vmem:[%s4007_s0] sm:$0xff]  ;;  %v3272_v6 = vmov 0.0  }
  0x3a   :  { %3069 = vset.pattern.permute.xlu1 %v3271_v1  ;;  %3068 = vset.pattern.permute.xlu0 %v3271_v1  ;;  %v84_v4 = vld [vmem:[%s4007_s0 + $0x18] sm:$0xff]  ;;  %v82_v5 = vld [vmem:[%s4007_s0 + $0x8] sm:$0xff]  ;;  %v85_v12 = vld [vmem:[%s4007_s0 + $0x20] sm:$0xff] }
  0x3b   :  { %98 = vperm.xlu1 %3069, %v83_v2   ;;  %92 = vperm.xlu0 %3068, %v81_v3   ;;  %v140_v7 = vld [vmem:[#allocation4 + $0x8] sm:$0xff]  ;;  %v139_v10 = vld [vmem:[#allocation4] sm:$0xff]  ;;  %v142_v13 = vld [vmem:[#allocation4 + $0x18] sm:$0xff] }
  0x3c   :  { %289 = vmatprep.mubr.f32.mxu0 %v3272_v6  ;;  %402 = vmatprep.mubr.f32.mxu1 %v3272_v6  ;;  %v86_v8 = vld [vmem:[%s4007_s0 + $0x28] sm:$0xff]  ;;  %v146_v14 = vld [vmem:[#allocation4 + $0x38] sm:$0xff]  ;;  %v141_v16 = vld [vmem:[#allocation4 + $0x10] sm:$0xff] }
  0x3d   :  { %v144_v9 = vld [vmem:[#allocation4 + $0x28] sm:$0xff]  ;;  %v143_v11 = vld [vmem:[#allocation4 + $0x20] sm:$0xff]  ;;  %v145_v17 = vld [vmem:[#allocation4 + $0x30] sm:$0xff]  ;;  %v2401_v20 = vpack.c.bf16 %v146_v14, %v142_v13 }
  0x3e   :  { %v3407_v15 = vld [vmem:[%s4008_s1] sm:$0xff]  ;;  %v2369_v18 = vpack.c.bf16 %v144_v9, %v140_v7  ;;  %v2371_v19 = vpack.c.bf16 %v143_v11, %v139_v10  ;;  %v2403_v21 = vpack.c.bf16 %v145_v17, %v141_v16  ;;  %v148_v22 = vld [vmem:[#allocation4 + $0x48] sm:$0xff]  ;;  %v149_v30 = vld [vmem:[#allocation4 + $0x50] sm:$0xff] }
  0x3f   :  { %101 = vperm.xlu1 %3069, %v84_v4   ;;  %95 = vperm.xlu0 %3068, %v82_v5   ;;  %v152_v23 = vld [vmem:[#allocation4 + $0x68] sm:$0xff]  ;;  %v147_v24 = vld [vmem:[#allocation4 + $0x40] sm:$0xff]  ;;  %v150_v27 = vld [vmem:[#allocation4 + $0x58] sm:$0xff]  ;;  %vm905_vm0 = vcmp.gt.s32.totalorder %v3407_v15, 1  ;;  %vm722_vm1 = vcmp.gt.s32.totalorder %v3407_v15, 0  ;;  %vm1271_vm2 = vcmp.gt.s32.totalorder %v3407_v15, 3 }
  0x40   :  { %v2373_v25 = vpack.c.bf16 %v152_v23, %v148_v22  ;;  %v151_v26 = vld [vmem:[#allocation4 + $0x60] sm:$0xff]  ;;  %v154_v28 = vld [vmem:[#allocation4 + $0x78] sm:$0xff]  ;;  %v153_v31 = vld [vmem:[#allocation4 + $0x70] sm:$0xff]  ;;  %2370 = vmatprep.subr.bf16.mxu0 %v2369_v18  ;;  %2402 = vmatprep.subr.bf16.mxu1 %v2401_v20  ;;  %v906_v49 = vsel %vm905_vm0, 1, %v3271_v1  ;;  %v723_v50 = vsel %vm722_vm1, 1, %v3271_v1  ;;  %vm1088_vm3 = vcmp.gt.s32.totalorder %v3407_v15, 2 }
  0x41   :  { %v2405_v29 = vpack.c.bf16 %v154_v28, %v150_v27  ;;  %v156_v32 = vld [vmem:[#allocation4 + $0x88] sm:$0xff]  ;;  %v88_v33 = vld [vmem:[%s4007_s0 + $0x38] sm:$0xff]  ;;  %2372 = vmatpush1.bf16.msra.mxu0 %v2371_v19  ;;  %2404 = vmatpush1.bf16.msra.mxu1 %v2403_v21  ;;  %v2375_v36 = vpack.c.bf16 %v151_v26, %v147_v24  ;;  %v2407_v37 = vpack.c.bf16 %v153_v31, %v149_v30  ;;  %v155_v38 = vld [vmem:[#allocation4 + $0x80] sm:$0xff]  ;;  %v1272_v0 = vsel %vm1271_vm2, 1, %v3271_v1 }
  0x42   :  { %v87_v34 = vld [vmem:[%s4007_s0 + $0x30] sm:$0xff]  ;;  %v158_v39 = vld [vmem:[#allocation4 + $0x98] sm:$0xff]  ;;  %2374 = vmatprep.subr.bf16.mxu0 %v2373_v25  ;;  %v159_v42 = vld [vmem:[#allocation4 + $0xa0] sm:$0xff]  ;;  %v1089_v2 = vsel %vm1088_vm3, 1, %v3271_v1  ;;  %vm1637_vm4 = vcmp.gt.s32.totalorder %v3407_v15, 5  ;;  %vm1454_vm5 = vcmp.gt.s32.totalorder %v3407_v15, 4 }
  0x43   :  { %107 = vperm.xlu1 %3069, %v86_v8   ;;  %104 = vperm.xlu0 %3068, %v85_v12   ;;  %v160_v35 = vld [vmem:[#allocation4 + $0xa8] sm:$0xff]  ;;  %v162_v40 = vld [vmem:[#allocation4 + $0xb8] sm:$0xff]  ;;  %v157_v44 = vld [vmem:[#allocation4 + $0x90] sm:$0xff]  ;;  %v2379_v52 = vpack.c.bf16 %v159_v42, %v155_v38  ;;  %v1638_v17 = vsel %vm1637_vm4, 1, %v3271_v1  ;;  %v1455_v18 = vsel %vm1454_vm5, 1, %v3271_v1  ;;  %vm1992_vm6 = vcmp.gt.s32.totalorder %v3407_v15, 7 }
  0x44   :  { %2406 = vmatprep.subr.bf16.mxu1 %v2405_v29  ;;  %v2377_v41 = vpack.c.bf16 %v160_v35, %v156_v32  ;;  %v2409_v43 = vpack.c.bf16 %v162_v40, %v158_v39  ;;  %v161_v45 = vld [vmem:[#allocation4 + $0xb0] sm:$0xff]  ;;  %v164_v46 = vld [vmem:[#allocation4 + $0xc8] sm:$0xff]  ;;  %v166_v48 = vld [vmem:[#allocation4 + $0xd8] sm:$0xff]  ;;  %vm1820_vm7 = vcmp.gt.s32.totalorder %v3407_v15, 6  ;;  %v1993_v31 = vsel %vm1992_vm6, 1, %v3271_v1 }
  0x45   :  { %v168_v47 = vld [vmem:[#allocation4 + $0xe8] sm:$0xff]  ;;  %v170_v51 = vld [vmem:[#allocation4 + $0xf8] sm:$0xff]  ;;  %2376 = vmatpush1.bf16.msra.mxu0 %v2375_v36  ;;  %2408 = vmatpush1.bf16.msra.mxu1 %v2407_v37  ;;  %v2411_v53 = vpack.c.bf16 %v161_v45, %v157_v44  ;;  %v163_v54 = vld [vmem:[#allocation4 + $0xc0] sm:$0xff]  ;;  %v1821_v32 = vsel %vm1820_vm7, 1, %v3271_v1  ;;  %vm3275_vm7 = vmmov 0  }
  0x46   :  { %v167_v55 = vld [vmem:[#allocation4 + $0xe0] sm:$0xff]  ;;  %2378 = vmatprep.subr.bf16.mxu0 %v2377_v41  ;;  %2410 = vmatprep.subr.bf16.mxu1 %v2409_v43  ;;  %v2381_v56 = vpack.c.bf16 %v168_v47, %v164_v46  ;;  %v2413_v57 = vpack.c.bf16 %v170_v51, %v166_v48  ;;  %v165_v58 = vld [vmem:[#allocation4 + $0xd0] sm:$0xff]  ;;  %v172_v60 = vld [vmem:[#allocation4 + $0x108] sm:$0xff] }
  0x47   :  { %113 = vperm.xlu1 %3069, %v88_v33   ;;  %110 = vperm.xlu0 %3068, %v87_v34   ;;  %v169_v59 = vld [vmem:[#allocation4 + $0xf0] sm:$0xff]  ;;  %v176_v61 = vld [vmem:[#allocation4 + $0x128] sm:$0xff]  ;;  %v174_v62 = vld [vmem:[#allocation4 + $0x118] sm:$0xff]  ;;  %v2383_v3 = vpack.c.bf16 %v167_v55, %v163_v54 }
  0x48   :  { %v178_v63 = vld [vmem:[#allocation4 + $0x138] sm:$0xff]  ;;  %v2415_v4 = vpack.c.bf16 %v169_v59, %v165_v58  ;;  %v171_v5 = vld [vmem:[#allocation4 + $0x100] sm:$0xff]  ;;  %v2385_v8 = vpack.c.bf16 %v176_v61, %v172_v60  ;;  %v173_v10 = vld [vmem:[#allocation4 + $0x110] sm:$0xff]  ;;  %v89_v59 = vlaneseq }
  0x49   :  { %2380 = vmatpush1.bf16.msra.mxu0 %v2379_v52  ;;  %2412 = vmatpush1.bf16.msra.mxu1 %v2411_v53  ;;  %v175_v7 = vld [vmem:[#allocation4 + $0x120] sm:$0xff]  ;;  %v2417_v9 = vpack.c.bf16 %v178_v63, %v174_v62  ;;  %v177_v11 = vld [vmem:[#allocation4 + $0x130] sm:$0xff]  ;;  %v180_v12 = vld [vmem:[#allocation4 + $0x148] sm:$0xff] }
  0x4a   :  { %2382 = vmatprep.subr.bf16.mxu0 %v2381_v56  ;;  %2414 = vmatprep.subr.bf16.mxu1 %v2413_v57  ;;  %v184_v13 = vld [vmem:[#allocation4 + $0x168] sm:$0xff]  ;;  %v182_v14 = vld [vmem:[#allocation4 + $0x158] sm:$0xff]  ;;  %v2387_v19 = vpack.c.bf16 %v175_v7, %v171_v5  ;;  %v2419_v20 = vpack.c.bf16 %v177_v11, %v173_v10  ;;  %v179_v21 = vld [vmem:[#allocation4 + $0x140] sm:$0xff] }
  0x4b   :  { %908 = vperm.xlu1 %3069, %v906_v49   ;;  %725 = vperm.xlu0 %3068, %v723_v50   ;;  %v186_v16 = vld [vmem:[#allocation4 + $0x178] sm:$0xff]  ;;  %v183_v22 = vld [vmem:[#allocation4 + $0x160] sm:$0xff]  ;;  %v2389_v23 = vpack.c.bf16 %v184_v13, %v180_v12  ;;  %v181_v25 = vld [vmem:[#allocation4 + $0x150] sm:$0xff] }
  0x4c   :  { %v2421_v24 = vpack.c.bf16 %v186_v16, %v182_v14  ;;  %v185_v26 = vld [vmem:[#allocation4 + $0x170] sm:$0xff]  ;;  %v188_v27 = vld [vmem:[#allocation4 + $0x188] sm:$0xff]  ;;  %v190_v29 = vld [vmem:[#allocation4 + $0x198] sm:$0xff]  ;;  %v2391_v33 = vpack.c.bf16 %v183_v22, %v179_v21 }
  0x4d   :  { %2384 = vmatpush1.bf16.msra.mxu0 %v2383_v3  ;;  %2416 = vmatpush1.bf16.msra.mxu1 %v2415_v4  ;;  %v192_v28 = vld [vmem:[#allocation4 + $0x1a8] sm:$0xff]  ;;  %v194_v30 = vld [vmem:[#allocation4 + $0x1b8] sm:$0xff]  ;;  %v2423_v34 = vpack.c.bf16 %v185_v26, %v181_v25  ;;  %v187_v35 = vld [vmem:[#allocation4 + $0x180] sm:$0xff] }
  0x4e   :  { %2386 = vmatprep.subr.bf16.mxu0 %v2385_v8  ;;  %2418 = vmatprep.subr.bf16.mxu1 %v2417_v9  ;;  %v191_v36 = vld [vmem:[#allocation4 + $0x1a0] sm:$0xff]  ;;  %v2393_v37 = vpack.c.bf16 %v192_v28, %v188_v27  ;;  %v2425_v38 = vpack.c.bf16 %v194_v30, %v190_v29  ;;  %v189_v39 = vld [vmem:[#allocation4 + $0x190] sm:$0xff]  ;;  %v196_v41 = vld [vmem:[#allocation4 + $0x1c8] sm:$0xff] }
  0x4f   :  { %1274 = vperm.xlu1 %3069, %v1272_v0   ;;  %1091 = vperm.xlu0 %3068, %v1089_v2   ;;  %v193_v40 = vld [vmem:[#allocation4 + $0x1b0] sm:$0xff]  ;;  %v200_v42 = vld [vmem:[#allocation4 + $0x1e8] sm:$0xff]  ;;  %v198_v43 = vld [vmem:[#allocation4 + $0x1d8] sm:$0xff]  ;;  %v2395_v1 = vpack.c.bf16 %v191_v36, %v187_v35  ;;  %v3454_v0 = vand.u32 127, %v89_v59 }
  0x50   :  { %v202_v44 = vld [vmem:[#allocation4 + $0x1f8] sm:$0xff]  ;;  %v2427_v15 = vpack.c.bf16 %v193_v40, %v189_v39  ;;  %v195_v45 = vld [vmem:[#allocation4 + $0x1c0] sm:$0xff]  ;;  %v2397_v47 = vpack.c.bf16 %v200_v42, %v196_v41  ;;  %v197_v49 = vld [vmem:[#allocation4 + $0x1d0] sm:$0xff] }
  0x51   :  { %2388 = vmatpush1.bf16.msra.mxu0 %v2387_v19  ;;  %2420 = vmatpush1.bf16.msra.mxu1 %v2419_v20  ;;  %v199_v46 = vld [vmem:[#allocation4 + $0x1e0] sm:$0xff]  ;;  %v2429_v48 = vpack.c.bf16 %v202_v44, %v198_v43  ;;  %v201_v50 = vld [vmem:[#allocation4 + $0x1f0] sm:$0xff]  ;;  %v489_v51 = vld [vmem:[#allocation6 + $0x8] sm:$0xff] }
  0x52   :  { %2390 = vmatprep.subr.bf16.mxu0 %v2389_v23  ;;  %2422 = vmatprep.subr.bf16.mxu1 %v2421_v24  ;;  %v493_v52 = vld [vmem:[#allocation6 + $0x28] sm:$0xff]  ;;  %v491_v53 = vld [vmem:[#allocation6 + $0x18] sm:$0xff]  ;;  %v2399_v55 = vpack.c.bf16 %v199_v46, %v195_v45  ;;  %v2431_v56 = vpack.c.bf16 %v201_v50, %v197_v49  ;;  %v488_v60 = vld [vmem:[#allocation6] sm:$0xff] }
  0x53   :  { %1640 = vperm.xlu1 %3069, %v1638_v17   ;;  %1457 = vperm.xlu0 %3068, %v1455_v18   ;;  %v495_v54 = vld [vmem:[#allocation6 + $0x38] sm:$0xff]  ;;  %v3447_v57 = vpack.c.bf16 %v493_v52, %v489_v51  ;;  %v492_v61 = vld [vmem:[#allocation6 + $0x20] sm:$0xff]  ;;  %v490_v62 = vld [vmem:[#allocation6 + $0x10] sm:$0xff]  ;;  %v3273_v18 = vmov 1.0  }
  0x54   :  { %v3449_v58 = vpack.c.bf16 %v495_v54, %v491_v53  ;;  %v494_v63 = vld [vmem:[#allocation6 + $0x30] sm:$0xff]  ;;  %v497_v2 = vld [vmem:[#allocation6 + $0x48] sm:$0xff]  ;;  %v499_v4 = vld [vmem:[#allocation6 + $0x58] sm:$0xff]  ;;  %v3456_v7 = vpack.c.bf16 %v492_v61, %v488_v60 }
  0x55   :  { %2392 = vmatpush1.bf16.msra.mxu0 %v2391_v33  ;;  %2424 = vmatpush1.bf16.msra.mxu1 %v2423_v34  ;;  %v501_v3 = vld [vmem:[#allocation6 + $0x68] sm:$0xff]  ;;  %v503_v5 = vld [vmem:[#allocation6 + $0x78] sm:$0xff]  ;;  %v3458_v8 = vpack.c.bf16 %v494_v63, %v490_v62  ;;  %v496_v9 = vld [vmem:[#allocation6 + $0x40] sm:$0xff] }
  0x56   :  { %2394 = vmatprep.subr.bf16.mxu0 %v2393_v37  ;;  %2426 = vmatprep.subr.bf16.mxu1 %v2425_v38  ;;  %v500_v11 = vld [vmem:[#allocation6 + $0x60] sm:$0xff]  ;;  %v498_v12 = vld [vmem:[#allocation6 + $0x50] sm:$0xff]  ;;  %v3461_v14 = vpack.c.bf16 %v501_v3, %v497_v2  ;;  %v3463_v16 = vpack.c.bf16 %v503_v5, %v499_v4  ;;  %v505_v17 = vld [vmem:[#allocation6 + $0x88] sm:$0xff] }
  0x57   :  { %1995 = vperm.xlu1 %3069, %v1993_v31   ;;  %1823 = vperm.xlu0 %3068, %v1821_v32   ;;  %v502_v13 = vld [vmem:[#allocation6 + $0x70] sm:$0xff]  ;;  %v509_v19 = vld [vmem:[#allocation6 + $0xa8] sm:$0xff]  ;;  %v507_v20 = vld [vmem:[#allocation6 + $0x98] sm:$0xff]  ;;  %v3469_v22 = vpack.c.bf16 %v500_v11, %v496_v9 }
  0x58   :  { %v511_v21 = vld [vmem:[#allocation6 + $0xb8] sm:$0xff]  ;;  %v3471_v23 = vpack.c.bf16 %v502_v13, %v498_v12  ;;  %v504_v24 = vld [vmem:[#allocation6 + $0x80] sm:$0xff]  ;;  %v506_v27 = vld [vmem:[#allocation6 + $0x90] sm:$0xff]  ;;  %v3478_v29 = vpack.c.bf16 %v509_v19, %v505_v17 }
  0x59   :  { %2396 = vmatpush1.bf16.msra.mxu0 %v2395_v1  ;;  %2428 = vmatpush1.bf16.msra.mxu1 %v2427_v15  ;;  %v508_v26 = vld [vmem:[#allocation6 + $0xa0] sm:$0xff]  ;;  %v510_v28 = vld [vmem:[#allocation6 + $0xb0] sm:$0xff]  ;;  %v3480_v30 = vpack.c.bf16 %v511_v21, %v507_v20  ;;  %v513_v31 = vld [vmem:[#allocation6 + $0xc8] sm:$0xff] }
  0x5a   :  { %2398 = vmatprep.subr.bf16.mxu0 %v2397_v47  ;;  %2430 = vmatprep.subr.bf16.mxu1 %v2429_v48  ;;  %v517_v33 = vld [vmem:[#allocation6 + $0xe8] sm:$0xff]  ;;  %v515_v34 = vld [vmem:[#allocation6 + $0xd8] sm:$0xff]  ;;  %v3487_v36 = vpack.c.bf16 %v508_v26, %v504_v24  ;;  %v3489_v37 = vpack.c.bf16 %v510_v28, %v506_v27  ;;  %v512_v38 = vld [vmem:[#allocation6 + $0xc0] sm:$0xff] }
  0x5b   :  { %v519_v35 = vld [vmem:[#allocation6 + $0xf8] sm:$0xff]  ;;  %v516_v39 = vld [vmem:[#allocation6 + $0xe0] sm:$0xff]  ;;  %v514_v40 = vld [vmem:[#allocation6 + $0xd0] sm:$0xff]  ;;  %v3495_v42 = vpack.c.bf16 %v517_v33, %v513_v31 }
  0x5c   :  { %v518_v41 = vld [vmem:[#allocation6 + $0xf0] sm:$0xff]  ;;  %v3497_v43 = vpack.c.bf16 %v519_v35, %v515_v34  ;;  %v521_v44 = vld [vmem:[#allocation6 + $0x108] sm:$0xff]  ;;  %v523_v15 = vld [vmem:[#allocation6 + $0x118] sm:$0xff]  ;;  %v3507_v46 = vpack.c.bf16 %v516_v39, %v512_v38 }
  0x5d   :  { %2400 = vmatpush1.bf16.msra.mxu0 %v2399_v55  ;;  %2432 = vmatpush1.bf16.msra.mxu1 %v2431_v56  ;;  %v525_v1 = vld [vmem:[#allocation6 + $0x128] sm:$0xff]  ;;  %v527_v45 = vld [vmem:[#allocation6 + $0x138] sm:$0xff]  ;;  %v3509_v47 = vpack.c.bf16 %v518_v41, %v514_v40  ;;  %v520_v48 = vld [vmem:[#allocation6 + $0x100] sm:$0xff] }
  0x5e   :  { %2434 = vmatprep.subr.bf16.mxu0 %v3447_v57  ;;  %2466 = vmatprep.subr.bf16.mxu1 %v3449_v58  ;;  %v524_v50 = vld [vmem:[#allocation6 + $0x120] sm:$0xff]  ;;  %v522_v51 = vld [vmem:[#allocation6 + $0x110] sm:$0xff]  ;;  %v3516_v53 = vpack.c.bf16 %v525_v1, %v521_v44  ;;  %v3518_v54 = vpack.c.bf16 %v527_v45, %v523_v15  ;;  %v529_v55 = vld [vmem:[#allocation6 + $0x148] sm:$0xff] }
  0x5f   :  { %v526_v52 = vld [vmem:[#allocation6 + $0x130] sm:$0xff]  ;;  %v533_v60 = vld [vmem:[#allocation6 + $0x168] sm:$0xff]  ;;  %v531_v61 = vld [vmem:[#allocation6 + $0x158] sm:$0xff]  ;;  %v3524_v63 = vpack.c.bf16 %v524_v50, %v520_v48 }
  0x60   :  { %v535_v62 = vld [vmem:[#allocation6 + $0x178] sm:$0xff]  ;;  %v3526_v2 = vpack.c.bf16 %v526_v52, %v522_v51  ;;  %v528_v3 = vld [vmem:[#allocation6 + $0x140] sm:$0xff]  ;;  %v530_v5 = vld [vmem:[#allocation6 + $0x150] sm:$0xff] }
  0x61   :  { %v532_v4 = vld [vmem:[#allocation6 + $0x160] sm:$0xff]  ;;  %v534_v9 = vld [vmem:[#allocation6 + $0x170] sm:$0xff]  ;;  %v3535_v11 = vpack.c.bf16 %v535_v62, %v531_v61  ;;  %v537_v12 = vld [vmem:[#allocation6 + $0x188] sm:$0xff] }
  0x62   :  { %v541_v17 = vld [vmem:[#allocation6 + $0x1a8] sm:$0xff]  ;;  %v539_v19 = vld [vmem:[#allocation6 + $0x198] sm:$0xff]  ;;  %v3541_v21 = vpack.c.bf16 %v532_v4, %v528_v3  ;;  %v3543_v24 = vpack.c.bf16 %v534_v9, %v530_v5  ;;  %v540_v26 = vld [vmem:[#allocation6 + $0x1a0] sm:$0xff] }
  0x63   :  { %v543_v20 = vld [vmem:[#allocation6 + $0x1b8] sm:$0xff]  ;;  %v538_v27 = vld [vmem:[#allocation6 + $0x190] sm:$0xff]  ;;  %v3550_v31 = vpack.c.bf16 %v541_v17, %v537_v12  ;;  %v545_v33 = vld [vmem:[#allocation6 + $0x1c8] sm:$0xff] }
  0x64   :  { %v542_v28 = vld [vmem:[#allocation6 + $0x1b0] sm:$0xff]  ;;  %v549_v35 = vld [vmem:[#allocation6 + $0x1e8] sm:$0xff]  ;;  %v547_v38 = vld [vmem:[#allocation6 + $0x1d8] sm:$0xff] }
  0x65   :  { %v551_v39 = vld [vmem:[#allocation6 + $0x1f8] sm:$0xff]  ;;  %v3560_v41 = vpack.c.bf16 %v542_v28, %v538_v27  ;;  %v544_v44 = vld [vmem:[#allocation6 + $0x1c0] sm:$0xff]  ;;  %v546_v15 = vld [vmem:[#allocation6 + $0x1d0] sm:$0xff]  ;;  %v3567_v48 = vpack.c.bf16 %v549_v35, %v545_v33 }
  0x66   :  { %v548_v1 = vld [vmem:[#allocation6 + $0x1e0] sm:$0xff]  ;;  %v550_v45 = vld [vmem:[#allocation6 + $0x1f0] sm:$0xff] }
  0x67   :  { %v3575_v51 = vpack.c.bf16 %v548_v1, %v544_v44  ;;  %v3577_v52 = vpack.c.bf16 %v550_v45, %v546_v15 }
  0xba   :  { %v93_v10 = vpop.permute.xlu0 %92  ;;  %v99_v32 = vpop.permute.xlu1 %98 }
  0xbb   :  { %vm115_vm8 = vcmp.eq.s32.totalorder %v93_v10, %v3454_v0  ;;  %vm117_vm10 = vcmp.eq.s32.totalorder %v99_v32, %v3454_v0  ;;  %v3533_v10 = vpack.c.bf16 %v533_v60, %v529_v55  ;;  %v3552_v32 = vpack.c.bf16 %v543_v20, %v539_v19  ;;  %v203_v55 = vld [vmem:[%s4010_s3] sm:$0xf] }
  0xbc   :  { %2220 = vmatmul.mubr.msk.f32.vlgmr.msra.gmra.mrb[0].mxu0 %vm115_vm8, %v3273_v18  ;;  %2228 = vmatmul.mubr.msk.f32.vlgmr.msra.gmra.mrb[0].mxu1 %vm115_vm8, %v3273_v18 }
  0xbd   :  { %2436 = vmatpush1.bf16.msra.mxu0 %v3456_v7  ;;  %2468 = vmatpush1.bf16.msra.mxu1 %v3458_v8 }
  0xbe   :  { %v96_v25 = vpop.permute.xlu0 %95  ;;  %295 = vmatprep.mubr.f32.mxu0 %v3272_v6  ;;  %408 = vmatprep.mubr.f32.mxu1 %v3272_v6  ;;  %v102_v49 = vpop.permute.xlu1 %101 }
  0xbf   :  { %vm116_vm9 = vcmp.eq.s32.totalorder %v96_v25, %v3454_v0  ;;  %2438 = vmatprep.subr.bf16.mxu0 %v3461_v14  ;;  %2470 = vmatprep.subr.bf16.mxu1 %v3463_v16  ;;  %vm118_vm11 = vcmp.eq.s32.totalorder %v102_v49, %v3454_v0  ;;  %v536_v25 = vld [vmem:[#allocation6 + $0x180] sm:$0xff]  ;;  %v3569_v49 = vpack.c.bf16 %v551_v39, %v547_v38 }
  0xc0   :  { %2221 = vmatmul.mubr.msk.f32.gmra.mrb[2].mxu0 %vm116_vm9, %v3273_v18  ;;  %2229 = vmatmul.mubr.msk.f32.gmra.mrb[2].mxu1 %vm116_vm9, %v3273_v18  ;;  %v3558_v40 = vpack.c.bf16 %v540_v26, %v536_v25  ;;  %vm2204_vm9 = vcmask 7168  }
  0xc1   :  { %2440 = vmatpush1.bf16.msra.mxu0 %v3469_v22  ;;  %2472 = vmatpush1.bf16.msra.mxu1 %v3471_v23 }
  0xc2   :  { %301 = vmatprep.mubr.f32.mxu0 %v3272_v6  ;;  %414 = vmatprep.mubr.f32.mxu1 %v3272_v6  ;;  %v105_v56 = vpop.permute.xlu0 %104  ;;  %v108_v13 = vpop.permute.xlu1 %107 }
  0xc3   :  { %2442 = vmatprep.subr.bf16.mxu0 %v3478_v29  ;;  %2474 = vmatprep.subr.bf16.mxu1 %v3480_v30  ;;  %vm119_vm12 = vcmp.eq.s32.totalorder %v105_v56, %v3454_v0  ;;  %vm120_vm13 = vcmp.eq.s32.totalorder %v108_v13, %v3454_v0 }
  0xc4   :  { %2222 = vmatmul.mubr.msk.f32.gmra.mrb[4].mxu0 %vm117_vm10, %v3273_v18  ;;  %2230 = vmatmul.mubr.msk.f32.gmra.mrb[4].mxu1 %vm117_vm10, %v3273_v18 }
  0xc5   :  { %2444 = vmatpush1.bf16.msra.mxu0 %v3487_v36  ;;  %2476 = vmatpush1.bf16.msra.mxu1 %v3489_v37 }
  0xc6   :  { %307 = vmatprep.mubr.f32.mxu0 %v3272_v6  ;;  %420 = vmatprep.mubr.f32.mxu1 %v3272_v6  ;;  %v111_v34 = vpop.permute.xlu0 %110  ;;  %v114_v50 = vpop.permute.xlu1 %113 }
  0xc7   :  { %2446 = vmatprep.subr.bf16.mxu0 %v3495_v42  ;;  %2478 = vmatprep.subr.bf16.mxu1 %v3497_v43  ;;  %vm121_vm14 = vcmp.eq.s32.totalorder %v111_v34, %v3454_v0  ;;  %vm122_vm15 = vcmp.eq.s32.totalorder %v114_v50, %v3454_v0  ;;  %v206_v0 = vshrl.u32 %v89_v59, 7 }
  0xc8   :  { %2223 = vmatmul.mubr.msk.f32.gmra.mrb[6].mxu0 %vm118_vm11, %v3273_v18  ;;  %2231 = vmatmul.mubr.msk.f32.gmra.mrb[6].mxu1 %vm118_vm11, %v3273_v18 }
  0xc9   :  { %2448 = vmatpush1.bf16.msra.mxu0 %v3507_v46  ;;  %2480 = vmatpush1.bf16.msra.mxu1 %v3509_v47  ;;  %v211_v56 = vsub.s32 1, %v206_v0  ;;  %v219_v4 = vsub.s32 3, %v206_v0  ;;  %v215_v20 = vsub.s32 2, %v206_v0 }
  0xca   :  { %313 = vmatprep.mubr.f32.mxu0 %v3272_v6  ;;  %426 = vmatprep.mubr.f32.mxu1 %v3272_v6 }
  0xcb   :  { %2450 = vmatprep.subr.bf16.mxu0 %v3516_v53  ;;  %2482 = vmatprep.subr.bf16.mxu1 %v3518_v54  ;;  %v3634_v61 = vrot.slane %v203_v55, %v211_v56  ;;  %v3638_v19 = vrot.slane %v203_v55, %v219_v4  ;;  %v3641_v26 = vrot.slane %v203_v55, %v215_v20 }
  0xcc   :  { %2224 = vmatmul.mubr.msk.f32.gmra.mrb[8].mxu0 %vm119_vm12, %v3273_v18  ;;  %2232 = vmatmul.mubr.msk.f32.gmra.mrb[8].mxu1 %vm119_vm12, %v3273_v18 }
  0xcd   :  { %2452 = vmatpush1.bf16.msra.mxu0 %v3524_v63  ;;  %2484 = vmatpush1.bf16.msra.mxu1 %v3526_v2 }
  0xce   :  { %319 = vmatprep.mubr.f32.mxu0 %v3272_v6  ;;  %432 = vmatprep.mubr.f32.mxu1 %v3272_v6 }
  0xcf   :  { %2454 = vmatprep.subr.bf16.mxu0 %v3533_v10  ;;  %2486 = vmatprep.subr.bf16.mxu1 %v3535_v11 }
  0xd0   :  { %2225 = vmatmul.mubr.msk.f32.gmra.mrb[10].mxu0 %vm120_vm13, %v3273_v18  ;;  %2233 = vmatmul.mubr.msk.f32.gmra.mrb[10].mxu1 %vm120_vm13, %v3273_v18 }
  0xd1   :  { %2456 = vmatpush1.bf16.msra.mxu0 %v3541_v21  ;;  %2488 = vmatpush1.bf16.msra.mxu1 %v3543_v24 }
  0xd2   :  { %325 = vmatprep.mubr.f32.mxu0 %v3272_v6  ;;  %438 = vmatprep.mubr.f32.mxu1 %v3272_v6 }
  0xd3   :  { %2458 = vmatprep.subr.bf16.mxu0 %v3550_v31  ;;  %2490 = vmatprep.subr.bf16.mxu1 %v3552_v32 }
  0xd4   :  { %2226 = vmatmul.mubr.msk.f32.gmra.mrb[12].mxu0 %vm121_vm14, %v3273_v18  ;;  %2234 = vmatmul.mubr.msk.f32.gmra.mrb[12].mxu1 %vm121_vm14, %v3273_v18 }
  0xd5   :  { %2460 = vmatpush1.bf16.msra.mxu0 %v3558_v40  ;;  %2492 = vmatpush1.bf16.msra.mxu1 %v3560_v41 }
  0xd6   :  { %331 = vmatprep.mubr.f32.mxu0 %v3272_v6  ;;  %444 = vmatprep.mubr.f32.mxu1 %v3272_v6 }
  0xd7   :  { %2462 = vmatprep.subr.bf16.mxu0 %v3567_v48  ;;  %2494 = vmatprep.subr.bf16.mxu1 %v3569_v49 }
  0xd8   :  { %2227 = vmatmul.mubr.msk.f32.gmra.mrb[14].mxu0 %vm122_vm15, %v3273_v18  ;;  %2235 = vmatmul.mubr.msk.f32.gmra.mrb[14].mxu1 %vm122_vm15, %v3273_v18  ;;  %v207_v18 = vsub.s32 0, %v206_v0  ;;  %v726_v0 = vpop.permute.xlu0 %725 }
  0xd9   :  { %2464 = vmatpush1.bf16.msra.mxu0 %v3575_v51  ;;  %2496 = vmatpush1.bf16.msra.mxu1 %v3577_v52  ;;  %vm727_vm0 = vcmp.eq.s32.totalorder %v726_v0, 1 }
  0xda   :  { %616 = vmatprep.mubr.f32.mxu0 %v3272_v6  ;;  %687 = vmatprep.mubr.f32.mxu1 %v3272_v6  ;;  %v3632_v60 = vrot.slane %v203_v55, %v207_v18 }
  0xdb   :  { %2498 = vmatprep.subr.bf16.mxu0 %v3447_v57  ;;  %2530 = vmatprep.subr.bf16.mxu1 %v3449_v58 }
  0xdc   :  { %617 = vmatmul.mubr.f32.vlgmr.msra.gmra.mrb[0].mxu0 %v3272_v6  ;;  %688 = vmatmul.mubr.f32.vlgmr.msra.gmra.mrb[0].mxu1 %v3272_v6 }
  0xdd   :  { %2500 = vmatpush1.bf16.msra.mxu0 %v3456_v7  ;;  %2532 = vmatpush1.bf16.msra.mxu1 %v3458_v8 }
  0xde   :  { %2502 = vmatprep.subr.bf16.mxu0 %v3461_v14  ;;  %2534 = vmatprep.subr.bf16.mxu1 %v3463_v16 }
  0xdf   :  { %799 = vmatprep.mubr.f32.mxu0 %v3272_v6  ;;  %870 = vmatprep.mubr.f32.mxu1 %v3272_v6 }
  0xe1   :  { %2504 = vmatpush1.bf16.msra.mxu0 %v3469_v22  ;;  %2536 = vmatpush1.bf16.msra.mxu1 %v3471_v23 }
  0xe2   :  { %2506 = vmatprep.subr.bf16.mxu0 %v3478_v29  ;;  %2538 = vmatprep.subr.bf16.mxu1 %v3480_v30 }
  0xe5   :  { %2508 = vmatpush1.bf16.msra.mxu0 %v3487_v36  ;;  %2540 = vmatpush1.bf16.msra.mxu1 %v3489_v37 }
  0xe6   :  { %2510 = vmatprep.subr.bf16.mxu0 %v3495_v42  ;;  %2542 = vmatprep.subr.bf16.mxu1 %v3497_v43 }
  0xe9   :  { %2512 = vmatpush1.bf16.msra.mxu0 %v3507_v46  ;;  %2544 = vmatpush1.bf16.msra.mxu1 %v3509_v47 }
  0xea   :  { %2514 = vmatprep.subr.bf16.mxu0 %v3516_v53  ;;  %2546 = vmatprep.subr.bf16.mxu1 %v3518_v54 }
  0xed   :  { %2516 = vmatpush1.bf16.msra.mxu0 %v3524_v63  ;;  %2548 = vmatpush1.bf16.msra.mxu1 %v3526_v2 }
  0xee   :  { %2518 = vmatprep.subr.bf16.mxu0 %v3533_v10  ;;  %2550 = vmatprep.subr.bf16.mxu1 %v3535_v11 }
  0xf1   :  { %2520 = vmatpush1.bf16.msra.mxu0 %v3541_v21  ;;  %2552 = vmatpush1.bf16.msra.mxu1 %v3543_v24 }
  0xf2   :  { %2522 = vmatprep.subr.bf16.mxu0 %v3550_v31  ;;  %2554 = vmatprep.subr.bf16.mxu1 %v3552_v32 }
  0xf5   :  { %2524 = vmatpush1.bf16.msra.mxu0 %v3558_v40  ;;  %2556 = vmatpush1.bf16.msra.mxu1 %v3560_v41 }
  0xf6   :  { %2526 = vmatprep.subr.bf16.mxu0 %v3567_v48  ;;  %2558 = vmatprep.subr.bf16.mxu1 %v3569_v49 }
  0xf9   :  { %2528 = vmatpush1.bf16.msra.mxu0 %v3575_v51  ;;  %2560 = vmatpush1.bf16.msra.mxu1 %v3577_v52 }
  0xfa   :  { %2562 = vmatprep.subr.bf16.mxu0 %v3447_v57  ;;  %2594 = vmatprep.subr.bf16.mxu1 %v3449_v58 }
 0x1af   :  { %v618_v62 = vpop.f32.mrb[0].mxu0  ;;  %v689_v3 = vpop.f32.mrb[0].mxu1 }
 0x1b0   :  { %v2993_v5 = vadd.f32 %v618_v62, %v3632_v60  ;;  %v620_v9 = vpop.f32.mrb[1].mxu0  ;;  %v691_v12 = vpop.f32.mrb[1].mxu1  ;;  %v3009_v28 = vadd.f32 %v689_v3, %v3641_v26 }
 0x1b1   :  { %v2994_v13 = vadd.f32 %v620_v9, %v3634_v61  ;;  %v3010_v25 = vadd.f32 %v691_v12, %v3638_v19 }
 0x1b2   :  { %v2236_v59 = vmul.f32 -1.442695, %v2993_v5 }
 0x1b3   :  { %v2237_v17 = vmul.f32 -1.442695, %v2994_v13  ;;  %v2238_v27 = vmul.f32 -1.442695, %v3010_v25 }
 0x1b4   :  { %3070 = vpow2.f32 %v2236_v59 }
 0x1b5   :  { %3072 = vpow2.f32 %v2237_v17 }
 0x1b6   :  { %3074 = vpow2.f32 %v2238_v27 }
 0x1b7   :  { %3076 = vtanh.f32 %v3009_v28 }
 0x1be   :  { %v3071_v33 = vpop.eup %3070 }
 0x1bf   :  { %v3073_v34 = vpop.eup %3072  ;;  %v701_v35 = vadd.f32 1.0, %v3071_v33 }
 0x1c0   :  { %v707_v38 = vadd.f32 1.0, %v3073_v34  ;;  %v3075_v39 = vpop.eup %3074 }
 0x1c1   :  { %3078 = vrcp.f32 %v701_v35  ;;  %v3077_v44 = vpop.eup %3076  ;;  %v714_v50 = vadd.f32 1.0, %v3075_v39 }
 0x1c2   :  { %3080 = vrcp.f32 %v707_v38 }
 0x1c3   :  { %3082 = vrcp.f32 %v714_v50 }
 0x1cb   :  { %v3079_v1 = vpop.eup %3078 }
 0x1cc   :  { %v3081_v15 = vpop.eup %3080  ;;  %v718_v45 = vmul.f32 %v3079_v1, %v3077_v44 }
 0x1cd   :  { %v717_v18 = vmul.f32 0.0, %v3081_v15  ;;  %v3083_v62 = vpop.eup %3082 }
 0x1cf   :  { %v719_v55 = vadd.f32 %v718_v45, %v717_v18 }
 0x1d1   :  { %3084 = vtanh.f32 %v719_v55  ;;  %v3644_v56 = vsel %vm727_vm0, %v719_v55, 0.0  ;;  %v909_v55 = vpop.permute.xlu1 %908 }
 0x1d2   :  { %vm910_vm1 = vcmp.eq.s32.totalorder %v909_v55, 1 }
 0x1db   :  { %v3085_v3 = vpop.eup %3084 }
 0x1dc   :  { %v721_v4 = vmul.f32 %v3085_v3, %v3083_v62 }
 0x1de   :  { %2239 = vmatmul.mubr.msk.f32.vlgmr.msra.gmra.mrb[2].mxu0 %vm727_vm0, %v721_v4  ;;  %2240 = vmatmul.mubr.msk.f32.vlgmr.msra.gmra.mrb[2].mxu1 %vm727_vm0, %v721_v4  ;;  %v3646_v5 = vsel %vm727_vm0, %v721_v4, 0.0 }
 0x1df   :  { %2564 = vmatpush1.bf16.msra.mxu0 %v3456_v7  ;;  %2596 = vmatpush1.bf16.msra.mxu1 %v3458_v8 }
 0x1e0   :  { %2566 = vmatprep.subr.bf16.mxu0 %v3461_v14  ;;  %2598 = vmatprep.subr.bf16.mxu1 %v3463_v16 }
 0x1e1   :  { %982 = vmatprep.mubr.f32.mxu0 %v3272_v6  ;;  %1053 = vmatprep.mubr.f32.mxu1 %v3272_v6 }
 0x1e3   :  { %2568 = vmatpush1.bf16.msra.mxu0 %v3469_v22  ;;  %2600 = vmatpush1.bf16.msra.mxu1 %v3471_v23 }
 0x1e4   :  { %2570 = vmatprep.subr.bf16.mxu0 %v3478_v29  ;;  %2602 = vmatprep.subr.bf16.mxu1 %v3480_v30 }
 0x1e7   :  { %2572 = vmatpush1.bf16.msra.mxu0 %v3487_v36  ;;  %2604 = vmatpush1.bf16.msra.mxu1 %v3489_v37 }
 0x1e8   :  { %2574 = vmatprep.subr.bf16.mxu0 %v3495_v42  ;;  %2606 = vmatprep.subr.bf16.mxu1 %v3497_v43 }
 0x1eb   :  { %2576 = vmatpush1.bf16.msra.mxu0 %v3507_v46  ;;  %2608 = vmatpush1.bf16.msra.mxu1 %v3509_v47 }
 0x1ec   :  { %2578 = vmatprep.subr.bf16.mxu0 %v3516_v53  ;;  %2610 = vmatprep.subr.bf16.mxu1 %v3518_v54 }
 0x1ef   :  { %2580 = vmatpush1.bf16.msra.mxu0 %v3524_v63  ;;  %2612 = vmatpush1.bf16.msra.mxu1 %v3526_v2 }
 0x1f0   :  { %2582 = vmatprep.subr.bf16.mxu0 %v3533_v10  ;;  %2614 = vmatprep.subr.bf16.mxu1 %v3535_v11 }
 0x1f3   :  { %2584 = vmatpush1.bf16.msra.mxu0 %v3541_v21  ;;  %2616 = vmatpush1.bf16.msra.mxu1 %v3543_v24 }
 0x1f4   :  { %2586 = vmatprep.subr.bf16.mxu0 %v3550_v31  ;;  %2618 = vmatprep.subr.bf16.mxu1 %v3552_v32 }
 0x1f7   :  { %2588 = vmatpush1.bf16.msra.mxu0 %v3558_v40  ;;  %2620 = vmatpush1.bf16.msra.mxu1 %v3560_v41 }
 0x1f8   :  { %2590 = vmatprep.subr.bf16.mxu0 %v3567_v48  ;;  %2622 = vmatprep.subr.bf16.mxu1 %v3569_v49 }
 0x1fb   :  { %2592 = vmatpush1.bf16.msra.mxu0 %v3575_v51  ;;  %2624 = vmatpush1.bf16.msra.mxu1 %v3577_v52 }
 0x1fc   :  { %2626 = vmatprep.subr.bf16.mxu0 %v3447_v57  ;;  %2658 = vmatprep.subr.bf16.mxu1 %v3449_v58 }
 0x2b1   :  { %v801_v9 = vpop.f32.mrb[2].mxu0  ;;  %v872_v12 = vpop.f32.mrb[2].mxu1 }
 0x2b2   :  { %v2995_v13 = vadd.f32 %v801_v9, %v3632_v60  ;;  %v803_v59 = vpop.f32.mrb[3].mxu0  ;;  %v874_v17 = vpop.f32.mrb[3].mxu1  ;;  %v3011_v34 = vadd.f32 %v872_v12, %v3641_v26 }
 0x2b3   :  { %v2996_v20 = vadd.f32 %v803_v59, %v3634_v61  ;;  %v3012_v28 = vadd.f32 %v874_v17, %v3638_v19 }
 0x2b4   :  { %v2241_v25 = vmul.f32 -1.442695, %v2995_v13 }
 0x2b5   :  { %v2242_v27 = vmul.f32 -1.442695, %v2996_v20  ;;  %v2243_v33 = vmul.f32 -1.442695, %v3012_v28 }
 0x2b6   :  { %3086 = vpow2.f32 %v2241_v25 }
 0x2b7   :  { %3088 = vpow2.f32 %v2242_v27 }
 0x2b8   :  { %3090 = vpow2.f32 %v2243_v33 }
 0x2b9   :  { %3092 = vtanh.f32 %v3011_v34 }
 0x2c0   :  { %v3087_v35 = vpop.eup %3086 }
 0x2c1   :  { %v3089_v38 = vpop.eup %3088  ;;  %v884_v39 = vadd.f32 1.0, %v3087_v35 }
 0x2c2   :  { %v890_v44 = vadd.f32 1.0, %v3089_v38  ;;  %v3091_v1 = vpop.eup %3090 }
 0x2c3   :  { %3094 = vrcp.f32 %v884_v39  ;;  %v3093_v15 = vpop.eup %3092  ;;  %v897_v18 = vadd.f32 1.0, %v3091_v1 }
 0x2c4   :  { %3096 = vrcp.f32 %v890_v44 }
 0x2c5   :  { %3098 = vrcp.f32 %v897_v18 }
 0x2cd   :  { %v3095_v45 = vpop.eup %3094 }
 0x2ce   :  { %v3097_v50 = vpop.eup %3096  ;;  %v901_v0 = vmul.f32 %v3095_v45, %v3093_v15 }
 0x2cf   :  { %v900_v62 = vmul.f32 %v3097_v50, %v3644_v56  ;;  %v3099_v9 = vpop.eup %3098 }
 0x2d1   :  { %v902_v3 = vadd.f32 %v901_v0, %v900_v62 }
 0x2d3   :  { %3100 = vtanh.f32 %v902_v3  ;;  %v3688_v4 = vsel %vm910_vm1, %v902_v3, %v3644_v56  ;;  %v1092_v3 = vpop.permute.xlu0 %1091 }
 0x2d4   :  { %vm1093_vm2 = vcmp.eq.s32.totalorder %v1092_v3, 1 }
 0x2dd   :  { %v3101_v12 = vpop.eup %3100 }
 0x2de   :  { %v904_v13 = vmul.f32 %v3101_v12, %v3099_v9 }
 0x2e0   :  { %v3691_v59 = vsel %vm910_vm1, %v904_v13, %v3646_v5 }
 0x2e1   :  { %983 = vmatmul.mubr.f32.vlgmr.msra.gmra.mrb[4].mxu0 %v3691_v59  ;;  %1054 = vmatmul.mubr.f32.vlgmr.msra.gmra.mrb[4].mxu1 %v3691_v59 }
 0x2e2   :  { %2628 = vmatpush1.bf16.msra.mxu0 %v3456_v7  ;;  %2660 = vmatpush1.bf16.msra.mxu1 %v3458_v8 }
 0x2e3   :  { %2630 = vmatprep.subr.bf16.mxu0 %v3461_v14  ;;  %2662 = vmatprep.subr.bf16.mxu1 %v3463_v16 }
 0x2e4   :  { %1165 = vmatprep.mubr.f32.mxu0 %v3272_v6  ;;  %1236 = vmatprep.mubr.f32.mxu1 %v3272_v6 }
 0x2e6   :  { %2632 = vmatpush1.bf16.msra.mxu0 %v3469_v22  ;;  %2664 = vmatpush1.bf16.msra.mxu1 %v3471_v23 }
 0x2e7   :  { %2634 = vmatprep.subr.bf16.mxu0 %v3478_v29  ;;  %2666 = vmatprep.subr.bf16.mxu1 %v3480_v30 }
 0x2ea   :  { %2636 = vmatpush1.bf16.msra.mxu0 %v3487_v36  ;;  %2668 = vmatpush1.bf16.msra.mxu1 %v3489_v37 }
 0x2eb   :  { %2638 = vmatprep.subr.bf16.mxu0 %v3495_v42  ;;  %2670 = vmatprep.subr.bf16.mxu1 %v3497_v43 }
 0x2ee   :  { %2640 = vmatpush1.bf16.msra.mxu0 %v3507_v46  ;;  %2672 = vmatpush1.bf16.msra.mxu1 %v3509_v47 }
 0x2ef   :  { %2642 = vmatprep.subr.bf16.mxu0 %v3516_v53  ;;  %2674 = vmatprep.subr.bf16.mxu1 %v3518_v54 }
 0x2f2   :  { %2644 = vmatpush1.bf16.msra.mxu0 %v3524_v63  ;;  %2676 = vmatpush1.bf16.msra.mxu1 %v3526_v2 }
 0x2f3   :  { %2646 = vmatprep.subr.bf16.mxu0 %v3533_v10  ;;  %2678 = vmatprep.subr.bf16.mxu1 %v3535_v11 }
 0x2f6   :  { %2648 = vmatpush1.bf16.msra.mxu0 %v3541_v21  ;;  %2680 = vmatpush1.bf16.msra.mxu1 %v3543_v24 }
 0x2f7   :  { %2650 = vmatprep.subr.bf16.mxu0 %v3550_v31  ;;  %2682 = vmatprep.subr.bf16.mxu1 %v3552_v32 }
 0x2fa   :  { %2652 = vmatpush1.bf16.msra.mxu0 %v3558_v40  ;;  %2684 = vmatpush1.bf16.msra.mxu1 %v3560_v41 }
 0x2fb   :  { %2654 = vmatprep.subr.bf16.mxu0 %v3567_v48  ;;  %2686 = vmatprep.subr.bf16.mxu1 %v3569_v49 }
 0x2fe   :  { %2656 = vmatpush1.bf16.msra.mxu0 %v3575_v51  ;;  %2688 = vmatpush1.bf16.msra.mxu1 %v3577_v52 }
 0x2ff   :  { %2690 = vmatprep.subr.bf16.mxu0 %v3447_v57  ;;  %2722 = vmatprep.subr.bf16.mxu1 %v3449_v58 }
 0x3b4   :  { %v984_v56 = vpop.f32.mrb[4].mxu0  ;;  %v1055_v5 = vpop.f32.mrb[4].mxu1 }
 0x3b5   :  { %v2997_v17 = vadd.f32 %v984_v56, %v3632_v60  ;;  %v986_v20 = vpop.f32.mrb[5].mxu0  ;;  %v1057_v25 = vpop.f32.mrb[5].mxu1  ;;  %v3013_v38 = vadd.f32 %v1055_v5, %v3641_v26 }
 0x3b6   :  { %v2998_v27 = vadd.f32 %v986_v20, %v3634_v61  ;;  %v3014_v34 = vadd.f32 %v1057_v25, %v3638_v19 }
 0x3b7   :  { %v2244_v28 = vmul.f32 -1.442695, %v2997_v17 }
 0x3b8   :  { %v2245_v33 = vmul.f32 -1.442695, %v2998_v27  ;;  %v2246_v35 = vmul.f32 -1.442695, %v3014_v34 }
 0x3b9   :  { %3102 = vpow2.f32 %v2244_v28 }
 0x3ba   :  { %3104 = vpow2.f32 %v2245_v33 }
 0x3bb   :  { %3106 = vpow2.f32 %v2246_v35 }
 0x3bc   :  { %3108 = vtanh.f32 %v3013_v38 }
 0x3c3   :  { %v3103_v39 = vpop.eup %3102 }
 0x3c4   :  { %v3105_v44 = vpop.eup %3104  ;;  %v1067_v1 = vadd.f32 1.0, %v3103_v39 }
 0x3c5   :  { %v1073_v15 = vadd.f32 1.0, %v3105_v44  ;;  %v3107_v45 = vpop.eup %3106 }
 0x3c6   :  { %3110 = vrcp.f32 %v1067_v1  ;;  %v3109_v50 = vpop.eup %3108  ;;  %v1080_v62 = vadd.f32 1.0, %v3107_v45 }
 0x3c7   :  { %3112 = vrcp.f32 %v1073_v15 }
 0x3c8   :  { %3114 = vrcp.f32 %v1080_v62 }
 0x3d0   :  { %v3111_v0 = vpop.eup %3110 }
 0x3d1   :  { %v3113_v18 = vpop.eup %3112  ;;  %v1084_v55 = vmul.f32 %v3111_v0, %v3109_v50 }
 0x3d2   :  { %v1083_v9 = vmul.f32 %v3113_v18, %v3688_v4  ;;  %v3115_v56 = vpop.eup %3114 }
 0x3d4   :  { %v1085_v12 = vadd.f32 %v1084_v55, %v1083_v9 }
 0x3d6   :  { %3116 = vtanh.f32 %v1085_v12  ;;  %v3735_v13 = vsel %vm1093_vm2, %v1085_v12, %v3688_v4  ;;  %v1275_v12 = vpop.permute.xlu1 %1274 }
 0x3d7   :  { %vm1276_vm3 = vcmp.eq.s32.totalorder %v1275_v12, 1 }
 0x3e0   :  { %v3117_v5 = vpop.eup %3116 }
 0x3e1   :  { %v1087_v17 = vmul.f32 %v3117_v5, %v3115_v56 }
 0x3e3   :  { %v3738_v20 = vsel %vm1093_vm2, %v1087_v17, %v3691_v59 }
 0x3e4   :  { %1166 = vmatmul.mubr.f32.vlgmr.msra.gmra.mrb[6].mxu0 %v3738_v20  ;;  %1237 = vmatmul.mubr.f32.vlgmr.msra.gmra.mrb[6].mxu1 %v3738_v20 }
 0x3e5   :  { %2692 = vmatpush1.bf16.msra.mxu0 %v3456_v7  ;;  %2724 = vmatpush1.bf16.msra.mxu1 %v3458_v8 }
 0x3e6   :  { %2694 = vmatprep.subr.bf16.mxu0 %v3461_v14  ;;  %2726 = vmatprep.subr.bf16.mxu1 %v3463_v16 }
 0x3e7   :  { %1348 = vmatprep.mubr.f32.mxu0 %v3272_v6  ;;  %1419 = vmatprep.mubr.f32.mxu1 %v3272_v6 }
 0x3e9   :  { %2696 = vmatpush1.bf16.msra.mxu0 %v3469_v22  ;;  %2728 = vmatpush1.bf16.msra.mxu1 %v3471_v23 }
 0x3ea   :  { %2698 = vmatprep.subr.bf16.mxu0 %v3478_v29  ;;  %2730 = vmatprep.subr.bf16.mxu1 %v3480_v30 }
 0x3ed   :  { %2700 = vmatpush1.bf16.msra.mxu0 %v3487_v36  ;;  %2732 = vmatpush1.bf16.msra.mxu1 %v3489_v37 }
 0x3ee   :  { %2702 = vmatprep.subr.bf16.mxu0 %v3495_v42  ;;  %2734 = vmatprep.subr.bf16.mxu1 %v3497_v43 }
 0x3f1   :  { %2704 = vmatpush1.bf16.msra.mxu0 %v3507_v46  ;;  %2736 = vmatpush1.bf16.msra.mxu1 %v3509_v47 }
 0x3f2   :  { %2706 = vmatprep.subr.bf16.mxu0 %v3516_v53  ;;  %2738 = vmatprep.subr.bf16.mxu1 %v3518_v54 }
 0x3f5   :  { %2708 = vmatpush1.bf16.msra.mxu0 %v3524_v63  ;;  %2740 = vmatpush1.bf16.msra.mxu1 %v3526_v2 }
 0x3f6   :  { %2710 = vmatprep.subr.bf16.mxu0 %v3533_v10  ;;  %2742 = vmatprep.subr.bf16.mxu1 %v3535_v11 }
 0x3f9   :  { %2712 = vmatpush1.bf16.msra.mxu0 %v3541_v21  ;;  %2744 = vmatpush1.bf16.msra.mxu1 %v3543_v24 }
 0x3fa   :  { %2714 = vmatprep.subr.bf16.mxu0 %v3550_v31  ;;  %2746 = vmatprep.subr.bf16.mxu1 %v3552_v32 }
 0x3fd   :  { %2716 = vmatpush1.bf16.msra.mxu0 %v3558_v40  ;;  %2748 = vmatpush1.bf16.msra.mxu1 %v3560_v41 }
 0x3fe   :  { %2718 = vmatprep.subr.bf16.mxu0 %v3567_v48  ;;  %2750 = vmatprep.subr.bf16.mxu1 %v3569_v49 }
 0x401   :  { %2720 = vmatpush1.bf16.msra.mxu0 %v3575_v51  ;;  %2752 = vmatpush1.bf16.msra.mxu1 %v3577_v52 }
 0x402   :  { %2754 = vmatprep.subr.bf16.mxu0 %v3447_v57  ;;  %2786 = vmatprep.subr.bf16.mxu1 %v3449_v58 }
 0x4b7   :  { %v1167_v4 = vpop.f32.mrb[6].mxu0  ;;  %v1238_v59 = vpop.f32.mrb[6].mxu1 }
 0x4b8   :  { %v2999_v25 = vadd.f32 %v1167_v4, %v3632_v60  ;;  %v1169_v27 = vpop.f32.mrb[7].mxu0  ;;  %v1240_v28 = vpop.f32.mrb[7].mxu1  ;;  %v3015_v44 = vadd.f32 %v1238_v59, %v3641_v26 }
 0x4b9   :  { %v3000_v33 = vadd.f32 %v1169_v27, %v3634_v61  ;;  %v3016_v38 = vadd.f32 %v1240_v28, %v3638_v19 }
 0x4ba   :  { %v2247_v34 = vmul.f32 -1.442695, %v2999_v25 }
 0x4bb   :  { %v2248_v35 = vmul.f32 -1.442695, %v3000_v33  ;;  %v2249_v39 = vmul.f32 -1.442695, %v3016_v38 }
 0x4bc   :  { %3118 = vpow2.f32 %v2247_v34 }
 0x4bd   :  { %3120 = vpow2.f32 %v2248_v35 }
 0x4be   :  { %3122 = vpow2.f32 %v2249_v39 }
 0x4bf   :  { %3124 = vtanh.f32 %v3015_v44 }
 0x4c6   :  { %v3119_v1 = vpop.eup %3118 }
 0x4c7   :  { %v3121_v15 = vpop.eup %3120  ;;  %v1250_v45 = vadd.f32 1.0, %v3119_v1 }
 0x4c8   :  { %v1256_v50 = vadd.f32 1.0, %v3121_v15  ;;  %v3123_v0 = vpop.eup %3122 }
 0x4c9   :  { %3126 = vrcp.f32 %v1250_v45  ;;  %v3125_v18 = vpop.eup %3124  ;;  %v1263_v9 = vadd.f32 1.0, %v3123_v0 }
 0x4ca   :  { %3128 = vrcp.f32 %v1256_v50 }
 0x4cb   :  { %3130 = vrcp.f32 %v1263_v9 }
 0x4d3   :  { %v3127_v55 = vpop.eup %3126 }
 0x4d4   :  { %v3129_v62 = vpop.eup %3128  ;;  %v1267_v3 = vmul.f32 %v3127_v55, %v3125_v18 }
 0x4d5   :  { %v1266_v56 = vmul.f32 %v3129_v62, %v3735_v13  ;;  %v3131_v4 = vpop.eup %3130 }
 0x4d7   :  { %v1268_v5 = vadd.f32 %v1267_v3, %v1266_v56 }
 0x4d9   :  { %3132 = vtanh.f32 %v1268_v5  ;;  %v3782_v17 = vsel %vm1276_vm3, %v1268_v5, %v3735_v13  ;;  %v1458_v5 = vpop.permute.xlu0 %1457 }
 0x4da   :  { %vm1459_vm4 = vcmp.eq.s32.totalorder %v1458_v5, 1  ;;  %v1641_v5 = vpop.permute.xlu1 %1640 }
 0x4db   :  { %vm1642_vm5 = vcmp.eq.s32.totalorder %v1641_v5, 1 }
 0x4e3   :  { %v3133_v59 = vpop.eup %3132 }
 0x4e4   :  { %v1270_v25 = vmul.f32 %v3133_v59, %v3131_v4 }
 0x4e6   :  { %v3785_v27 = vsel %vm1276_vm3, %v1270_v25, %v3738_v20 }
 0x4e7   :  { %1349 = vmatmul.mubr.f32.vlgmr.msra.gmra.mrb[8].mxu0 %v3785_v27  ;;  %1420 = vmatmul.mubr.f32.vlgmr.msra.gmra.mrb[8].mxu1 %v3785_v27 }
 0x4e8   :  { %2756 = vmatpush1.bf16.msra.mxu0 %v3456_v7  ;;  %2788 = vmatpush1.bf16.msra.mxu1 %v3458_v8 }
 0x4e9   :  { %2758 = vmatprep.subr.bf16.mxu0 %v3461_v14  ;;  %2790 = vmatprep.subr.bf16.mxu1 %v3463_v16 }
 0x4ea   :  { %1531 = vmatprep.mubr.f32.mxu0 %v3272_v6  ;;  %1602 = vmatprep.mubr.f32.mxu1 %v3272_v6 }
 0x4ec   :  { %2760 = vmatpush1.bf16.msra.mxu0 %v3469_v22  ;;  %2792 = vmatpush1.bf16.msra.mxu1 %v3471_v23 }
 0x4ed   :  { %2762 = vmatprep.subr.bf16.mxu0 %v3478_v29  ;;  %2794 = vmatprep.subr.bf16.mxu1 %v3480_v30 }
 0x4f0   :  { %2764 = vmatpush1.bf16.msra.mxu0 %v3487_v36  ;;  %2796 = vmatpush1.bf16.msra.mxu1 %v3489_v37 }
 0x4f1   :  { %2766 = vmatprep.subr.bf16.mxu0 %v3495_v42  ;;  %2798 = vmatprep.subr.bf16.mxu1 %v3497_v43 }
 0x4f4   :  { %2768 = vmatpush1.bf16.msra.mxu0 %v3507_v46  ;;  %2800 = vmatpush1.bf16.msra.mxu1 %v3509_v47 }
 0x4f5   :  { %2770 = vmatprep.subr.bf16.mxu0 %v3516_v53  ;;  %2802 = vmatprep.subr.bf16.mxu1 %v3518_v54 }
 0x4f8   :  { %2772 = vmatpush1.bf16.msra.mxu0 %v3524_v63  ;;  %2804 = vmatpush1.bf16.msra.mxu1 %v3526_v2 }
 0x4f9   :  { %2774 = vmatprep.subr.bf16.mxu0 %v3533_v10  ;;  %2806 = vmatprep.subr.bf16.mxu1 %v3535_v11 }
 0x4fc   :  { %2776 = vmatpush1.bf16.msra.mxu0 %v3541_v21  ;;  %2808 = vmatpush1.bf16.msra.mxu1 %v3543_v24 }
 0x4fd   :  { %2778 = vmatprep.subr.bf16.mxu0 %v3550_v31  ;;  %2810 = vmatprep.subr.bf16.mxu1 %v3552_v32 }
 0x500   :  { %2780 = vmatpush1.bf16.msra.mxu0 %v3558_v40  ;;  %2812 = vmatpush1.bf16.msra.mxu1 %v3560_v41 }
 0x501   :  { %2782 = vmatprep.subr.bf16.mxu0 %v3567_v48  ;;  %2814 = vmatprep.subr.bf16.mxu1 %v3569_v49 }
 0x504   :  { %2784 = vmatpush1.bf16.msra.mxu0 %v3575_v51  ;;  %2816 = vmatpush1.bf16.msra.mxu1 %v3577_v52 }
 0x505   :  { %2818 = vmatprep.subr.bf16.mxu0 %v3447_v57  ;;  %2850 = vmatprep.subr.bf16.mxu1 %v3449_v58 }
 0x5ba   :  { %v1350_v13 = vpop.f32.mrb[8].mxu0  ;;  %v1421_v20 = vpop.f32.mrb[8].mxu1 }
 0x5bb   :  { %v3001_v28 = vadd.f32 %v1350_v13, %v3632_v60  ;;  %v1352_v33 = vpop.f32.mrb[9].mxu0  ;;  %v1423_v34 = vpop.f32.mrb[9].mxu1  ;;  %v3017_v15 = vadd.f32 %v1421_v20, %v3641_v26 }
 0x5bc   :  { %v3002_v35 = vadd.f32 %v1352_v33, %v3634_v61  ;;  %v3018_v44 = vadd.f32 %v1423_v34, %v3638_v19 }
 0x5bd   :  { %v2250_v38 = vmul.f32 -1.442695, %v3001_v28 }
 0x5be   :  { %v2251_v39 = vmul.f32 -1.442695, %v3002_v35  ;;  %v2252_v1 = vmul.f32 -1.442695, %v3018_v44 }
 0x5bf   :  { %3134 = vpow2.f32 %v2250_v38 }
 0x5c0   :  { %3136 = vpow2.f32 %v2251_v39 }
 0x5c1   :  { %3138 = vpow2.f32 %v2252_v1 }
 0x5c2   :  { %3140 = vtanh.f32 %v3017_v15 }
 0x5c9   :  { %v3135_v45 = vpop.eup %3134 }
 0x5ca   :  { %v3137_v50 = vpop.eup %3136  ;;  %v1433_v0 = vadd.f32 1.0, %v3135_v45 }
 0x5cb   :  { %v1439_v18 = vadd.f32 1.0, %v3137_v50  ;;  %v3139_v55 = vpop.eup %3138 }
 0x5cc   :  { %3142 = vrcp.f32 %v1433_v0  ;;  %v3141_v62 = vpop.eup %3140  ;;  %v1446_v56 = vadd.f32 1.0, %v3139_v55 }
 0x5cd   :  { %3144 = vrcp.f32 %v1439_v18 }
 0x5ce   :  { %3146 = vrcp.f32 %v1446_v56 }
 0x5d6   :  { %v3143_v3 = vpop.eup %3142 }
 0x5d7   :  { %v3145_v9 = vpop.eup %3144  ;;  %v1450_v12 = vmul.f32 %v3143_v3, %v3141_v62 }
 0x5d8   :  { %v1449_v4 = vmul.f32 %v3145_v9, %v3782_v17  ;;  %v3147_v13 = vpop.eup %3146 }
 0x5da   :  { %v1451_v59 = vadd.f32 %v1450_v12, %v1449_v4 }
 0x5dc   :  { %3148 = vtanh.f32 %v1451_v59  ;;  %v3829_v25 = vsel %vm1459_vm4, %v1451_v59, %v3782_v17 }
 0x5e6   :  { %v3149_v20 = vpop.eup %3148 }
 0x5e7   :  { %v1453_v28 = vmul.f32 %v3149_v20, %v3147_v13 }
 0x5e9   :  { %v3832_v33 = vsel %vm1459_vm4, %v1453_v28, %v3785_v27 }
 0x5ea   :  { %1532 = vmatmul.mubr.f32.vlgmr.msra.gmra.mrb[10].mxu0 %v3832_v33  ;;  %1603 = vmatmul.mubr.f32.vlgmr.msra.gmra.mrb[10].mxu1 %v3832_v33 }
 0x5eb   :  { %2820 = vmatpush1.bf16.msra.mxu0 %v3456_v7  ;;  %2852 = vmatpush1.bf16.msra.mxu1 %v3458_v8 }
 0x5ec   :  { %2822 = vmatprep.subr.bf16.mxu0 %v3461_v14  ;;  %2854 = vmatprep.subr.bf16.mxu1 %v3463_v16 }
 0x5ed   :  { %1714 = vmatprep.mubr.f32.mxu0 %v3272_v6  ;;  %1785 = vmatprep.mubr.f32.mxu1 %v3272_v6 }
 0x5ef   :  { %2824 = vmatpush1.bf16.msra.mxu0 %v3469_v22  ;;  %2856 = vmatpush1.bf16.msra.mxu1 %v3471_v23 }
 0x5f0   :  { %2826 = vmatprep.subr.bf16.mxu0 %v3478_v29  ;;  %2858 = vmatprep.subr.bf16.mxu1 %v3480_v30 }
 0x5f3   :  { %2828 = vmatpush1.bf16.msra.mxu0 %v3487_v36  ;;  %2860 = vmatpush1.bf16.msra.mxu1 %v3489_v37 }
 0x5f4   :  { %2830 = vmatprep.subr.bf16.mxu0 %v3495_v42  ;;  %2862 = vmatprep.subr.bf16.mxu1 %v3497_v43 }
 0x5f7   :  { %2832 = vmatpush1.bf16.msra.mxu0 %v3507_v46  ;;  %2864 = vmatpush1.bf16.msra.mxu1 %v3509_v47 }
 0x5f8   :  { %2834 = vmatprep.subr.bf16.mxu0 %v3516_v53  ;;  %2866 = vmatprep.subr.bf16.mxu1 %v3518_v54 }
 0x5fb   :  { %2836 = vmatpush1.bf16.msra.mxu0 %v3524_v63  ;;  %2868 = vmatpush1.bf16.msra.mxu1 %v3526_v2 }
 0x5fc   :  { %2838 = vmatprep.subr.bf16.mxu0 %v3533_v10  ;;  %2870 = vmatprep.subr.bf16.mxu1 %v3535_v11 }
 0x5ff   :  { %2840 = vmatpush1.bf16.msra.mxu0 %v3541_v21  ;;  %2872 = vmatpush1.bf16.msra.mxu1 %v3543_v24 }
 0x600   :  { %2842 = vmatprep.subr.bf16.mxu0 %v3550_v31  ;;  %2874 = vmatprep.subr.bf16.mxu1 %v3552_v32 }
 0x603   :  { %2844 = vmatpush1.bf16.msra.mxu0 %v3558_v40  ;;  %2876 = vmatpush1.bf16.msra.mxu1 %v3560_v41 }
 0x604   :  { %2846 = vmatprep.subr.bf16.mxu0 %v3567_v48  ;;  %2878 = vmatprep.subr.bf16.mxu1 %v3569_v49 }
 0x607   :  { %2848 = vmatpush1.bf16.msra.mxu0 %v3575_v51  ;;  %2880 = vmatpush1.bf16.msra.mxu1 %v3577_v52 }
 0x608   :  { %2882 = vmatprep.subr.bf16.mxu0 %v3447_v57  ;;  %2914 = vmatprep.subr.bf16.mxu1 %v3449_v58 }
 0x6bd   :  { %v1533_v17 = vpop.f32.mrb[10].mxu0  ;;  %v1604_v27 = vpop.f32.mrb[10].mxu1 }
 0x6be   :  { %v3003_v34 = vadd.f32 %v1533_v17, %v3632_v60  ;;  %v1535_v35 = vpop.f32.mrb[11].mxu0  ;;  %v1606_v38 = vpop.f32.mrb[11].mxu1  ;;  %v3019_v50 = vadd.f32 %v1604_v27, %v3641_v26 }
 0x6bf   :  { %v3004_v39 = vadd.f32 %v1535_v35, %v3634_v61  ;;  %v3020_v15 = vadd.f32 %v1606_v38, %v3638_v19  ;;  %v2002_v35 = vld [vmem:[%s4012_s5 + $0x18] sm:$0xff] }
 0x6c0   :  { %v2253_v44 = vmul.f32 -1.442695, %v3003_v34  ;;  %v2001_v34 = vld [vmem:[%s4012_s5 + $0x10] sm:$0xff] }
 0x6c1   :  { %v2254_v1 = vmul.f32 -1.442695, %v3004_v39  ;;  %v2255_v45 = vmul.f32 -1.442695, %v3020_v15  ;;  %v2949_v38 = vpack.c.bf16 %v2002_v35, %v2001_v34  ;;  %v2003_v39 = vld [vmem:[%s4012_s5 + $0x20] sm:$0xff]  ;;  %v2005_v15 = vld [vmem:[%s4012_s5 + $0x30] sm:$0xff] }
 0x6c2   :  { %3150 = vpow2.f32 %v2253_v44  ;;  %v2004_v44 = vld [vmem:[%s4012_s5 + $0x28] sm:$0xff]  ;;  %v2107_v35 = vld [vmem:[#allocation8 + $0x78] sm:$0xff] }
 0x6c3   :  { %3152 = vpow2.f32 %v2254_v1  ;;  %v2952_v1 = vpack.c.bf16 %v2004_v44, %v2003_v39  ;;  %v2261_v39 = vld [vmem:[%s4013_s6] ss:$0 sm:$0xff] }
 0x6c4   :  { %3154 = vpow2.f32 %v2255_v45  ;;  %v2006_v45 = vld [vmem:[%s4012_s5 + $0x38] sm:$0xff] }
 0x6c5   :  { %3156 = vtanh.f32 %v3019_v50  ;;  %v2955_v50 = vpack.c.bf16 %v2006_v45, %v2005_v15  ;;  %v2262_v45 = vld [vmem:[%s4015_s8] ss:$0 sm:$0xff] }
 0x6cc   :  { %v3151_v57 = vpop.eup %3150 }
 0x6cd   :  { %v3153_v0 = vpop.eup %3152  ;;  %v1616_v58 = vadd.f32 1.0, %v3151_v57  ;;  %v2007_v57 = vld [vmem:[%s4012_s5 + $0x40] sm:$0xff] }
 0x6ce   :  { %v1622_v18 = vadd.f32 1.0, %v3153_v0  ;;  %v3155_v55 = vpop.eup %3154  ;;  %v2008_v0 = vld [vmem:[%s4012_s5 + $0x48] sm:$0xff] }
 0x6cf   :  { %3158 = vrcp.f32 %v1616_v58  ;;  %v3157_v62 = vpop.eup %3156  ;;  %v1629_v56 = vadd.f32 1.0, %v3155_v55  ;;  %v2958_v58 = vpack.c.bf16 %v2008_v0, %v2007_v57  ;;  %v2010_v55 = vld [vmem:[%s4012_s5 + $0x58] sm:$0xff]  ;;  %v2263_v0 = vld [vmem:[%s4016_s9] ss:$0 sm:$0xff] }
 0x6d0   :  { %3160 = vrcp.f32 %v1622_v18  ;;  %v2009_v18 = vld [vmem:[%s4012_s5 + $0x50] sm:$0xff] }
 0x6d1   :  { %3162 = vrcp.f32 %v1629_v56  ;;  %v2014_v56 = vld [vmem:[%s4012_s5 + $0x78] sm:$0xff] }
 0x6d9   :  { %v3159_v3 = vpop.eup %3158 }
 0x6da   :  { %v3161_v9 = vpop.eup %3160  ;;  %v1633_v12 = vmul.f32 %v3159_v3, %v3157_v62  ;;  %v2961_v62 = vpack.c.bf16 %v2010_v55, %v2009_v18  ;;  %v2011_v3 = vld [vmem:[%s4012_s5 + $0x60] sm:$0xff] }
 0x6db   :  { %v1632_v4 = vmul.f32 %v3161_v9, %v3829_v25  ;;  %v3163_v20 = vpop.eup %3162  ;;  %v2012_v9 = vld [vmem:[%s4012_s5 + $0x68] sm:$0xff]  ;;  %v2264_v55 = vld [vmem:[#allocation3] ss:$0 sm:$0xff] }
 0x6dd   :  { %v1634_v59 = vadd.f32 %v1633_v12, %v1632_v4  ;;  %v2964_v12 = vpack.c.bf16 %v2012_v9, %v2011_v3  ;;  %v2092_v4 = vld [vmem:[#allocation8] sm:$0xff] }
 0x6df   :  { %3164 = vtanh.f32 %v1634_v59  ;;  %v3876_v13 = vsel %vm1642_vm5, %v1634_v59, %v3829_v25  ;;  %v2093_v59 = vld [vmem:[#allocation8 + $0x8] sm:$0xff] }
 0x6e9   :  { %v3165_v28 = vpop.eup %3164 }
 0x6ea   :  { %v1636_v17 = vmul.f32 %v3165_v28, %v3163_v20  ;;  %v2970_v20 = vpack.c.bf16 %v2093_v59, %v2092_v4  ;;  %v2095_v28 = vld [vmem:[#allocation8 + $0x18] sm:$0xff] }
 0x6ec   :  { %v3879_v27 = vsel %vm1642_vm5, %v1636_v17, %v3832_v33  ;;  %v3274_v33 = vmov 0.0|0.0  }
 0x6ed   :  { %1715 = vmatmul.mubr.f32.vlgmr.msra.gmra.mrb[12].mxu0 %v3879_v27  ;;  %1786 = vmatmul.mubr.f32.vlgmr.msra.gmra.mrb[12].mxu1 %v3879_v27 }
 0x6ee   :  { %2884 = vmatpush1.bf16.msra.mxu0 %v3456_v7  ;;  %2916 = vmatpush1.bf16.msra.mxu1 %v3458_v8 }
 0x6ef   :  { %2886 = vmatprep.subr.bf16.mxu0 %v3461_v14  ;;  %2918 = vmatprep.subr.bf16.mxu1 %v3463_v16 }
 0x6f0   :  { %1896 = vmatprep.mubr.f32.mxu0 %v3272_v6  ;;  %1967 = vmatprep.mubr.f32.mxu1 %v3272_v6 }
 0x6f2   :  { %2888 = vmatpush1.bf16.msra.mxu0 %v3469_v22  ;;  %2920 = vmatpush1.bf16.msra.mxu1 %v3471_v23 }
 0x6f3   :  { %2890 = vmatprep.subr.bf16.mxu0 %v3478_v29  ;;  %2922 = vmatprep.subr.bf16.mxu1 %v3480_v30 }
 0x6f6   :  { %2892 = vmatpush1.bf16.msra.mxu0 %v3487_v36  ;;  %2924 = vmatpush1.bf16.msra.mxu1 %v3489_v37 }
 0x6f7   :  { %2894 = vmatprep.subr.bf16.mxu0 %v3495_v42  ;;  %2926 = vmatprep.subr.bf16.mxu1 %v3497_v43 }
 0x6fa   :  { %2896 = vmatpush1.bf16.msra.mxu0 %v3507_v46  ;;  %2928 = vmatpush1.bf16.msra.mxu1 %v3509_v47 }
 0x6fb   :  { %2898 = vmatprep.subr.bf16.mxu0 %v3516_v53  ;;  %2930 = vmatprep.subr.bf16.mxu1 %v3518_v54 }
 0x6fe   :  { %2900 = vmatpush1.bf16.msra.mxu0 %v3524_v63  ;;  %2932 = vmatpush1.bf16.msra.mxu1 %v3526_v2 }
 0x6ff   :  { %2902 = vmatprep.subr.bf16.mxu0 %v3533_v10  ;;  %2934 = vmatprep.subr.bf16.mxu1 %v3535_v11 }
 0x702   :  { %2904 = vmatpush1.bf16.msra.mxu0 %v3541_v21  ;;  %2936 = vmatpush1.bf16.msra.mxu1 %v3543_v24  ;;  %v1824_v24 = vpop.permute.xlu0 %1823 }
 0x703   :  { %2906 = vmatprep.subr.bf16.mxu0 %v3550_v31  ;;  %2938 = vmatprep.subr.bf16.mxu1 %v3552_v32  ;;  %vm1825_vm6 = vcmp.eq.s32.totalorder %v1824_v24, 1 }
 0x706   :  { %2908 = vmatpush1.bf16.msra.mxu0 %v3558_v40  ;;  %2940 = vmatpush1.bf16.msra.mxu1 %v3560_v41 }
 0x707   :  { %2910 = vmatprep.subr.bf16.mxu0 %v3567_v48  ;;  %2942 = vmatprep.subr.bf16.mxu1 %v3569_v49 }
 0x70a   :  { %2912 = vmatpush1.bf16.msra.mxu0 %v3575_v51  ;;  %2944 = vmatpush1.bf16.msra.mxu1 %v3577_v52  ;;  %v1999_v52 = vld [vmem:[%s4012_s5] sm:$0xff] }
 0x70b   :  { %2945 = vmatprep.subr.bf16.mxu0 %v3274_v33  ;;  %2969 = vmatprep.subr.bf16.mxu1 %v3274_v33 }
 0x7c0   :  { %v1716_v7 = vpop.f32.mrb[12].mxu0  ;;  %v1787_v8 = vpop.f32.mrb[12].mxu1 }
 0x7c1   :  { %v3005_v14 = vadd.f32 %v1716_v7, %v3632_v60  ;;  %v1718_v16 = vpop.f32.mrb[13].mxu0  ;;  %v1789_v22 = vpop.f32.mrb[13].mxu1  ;;  %v3021_v42 = vadd.f32 %v1787_v8, %v3641_v26  ;;  %v2097_v7 = vld [vmem:[#allocation8 + $0x28] sm:$0xff] }
 0x7c2   :  { %v3006_v23 = vadd.f32 %v1718_v16, %v3634_v61  ;;  %v3022_v36 = vadd.f32 %v1789_v22, %v3638_v19  ;;  %v2000_v19 = vld [vmem:[%s4012_s5 + $0x8] sm:$0xff]  ;;  %v2099_v16 = vld [vmem:[#allocation8 + $0x38] sm:$0xff] }
 0x7c3   :  { %v2256_v29 = vmul.f32 -1.442695, %v3005_v14  ;;  %v2946_v25 = vpack.c.bf16 %v2000_v19, %v1999_v52  ;;  %v2098_v14 = vld [vmem:[#allocation8 + $0x30] sm:$0xff] }
 0x7c4   :  { %v2257_v30 = vmul.f32 -1.442695, %v3006_v23  ;;  %v2258_v37 = vmul.f32 -1.442695, %v3022_v36  ;;  %v2979_v22 = vpack.c.bf16 %v2099_v16, %v2098_v14  ;;  %v2100_v23 = vld [vmem:[#allocation8 + $0x40] sm:$0xff]  ;;  %v2102_v36 = vld [vmem:[#allocation8 + $0x50] sm:$0xff] }
 0x7c5   :  { %3166 = vpow2.f32 %v2256_v29  ;;  %v2101_v29 = vld [vmem:[#allocation8 + $0x48] sm:$0xff] }
 0x7c6   :  { %3168 = vpow2.f32 %v2257_v30  ;;  %v2982_v30 = vpack.c.bf16 %v2101_v29, %v2100_v23 }
 0x7c7   :  { %3170 = vpow2.f32 %v2258_v37  ;;  %v2103_v37 = vld [vmem:[#allocation8 + $0x58] sm:$0xff] }
 0x7c8   :  { %3172 = vtanh.f32 %v3021_v42  ;;  %v2985_v42 = vpack.c.bf16 %v2103_v37, %v2102_v36 }
 0x7cf   :  { %v3167_v43 = vpop.eup %3166 }
 0x7d0   :  { %v3169_v46 = vpop.eup %3168  ;;  %v1799_v47 = vadd.f32 1.0, %v3167_v43  ;;  %v2104_v43 = vld [vmem:[#allocation8 + $0x60] sm:$0xff] }
 0x7d1   :  { %v1805_v53 = vadd.f32 1.0, %v3169_v46  ;;  %v3171_v54 = vpop.eup %3170  ;;  %v2105_v46 = vld [vmem:[#allocation8 + $0x68] sm:$0xff] }
 0x7d2   :  { %3174 = vrcp.f32 %v1799_v47  ;;  %v3173_v63 = vpop.eup %3172  ;;  %v1812_v21 = vadd.f32 1.0, %v3171_v54  ;;  %v2988_v47 = vpack.c.bf16 %v2105_v46, %v2104_v43 }
 0x7d3   :  { %3176 = vrcp.f32 %v1805_v53 }
 0x7d4   :  { %3178 = vrcp.f32 %v1812_v21 }
 0x7dc   :  { %v3175_v2 = vpop.eup %3174 }
 0x7dd   :  { %v3177_v10 = vpop.eup %3176  ;;  %v1816_v11 = vmul.f32 %v3175_v2, %v3173_v63 }
 0x7de   :  { %v1815_v31 = vmul.f32 %v3177_v10, %v3876_v13  ;;  %v3179_v41 = vpop.eup %3178 }
 0x7e0   :  { %v1817_v32 = vadd.f32 %v1816_v11, %v1815_v31 }
 0x7e2   :  { %3180 = vtanh.f32 %v1817_v32  ;;  %v3921_v40 = vsel %vm1825_vm6, %v1817_v32, %v3876_v13  ;;  %v2094_v13 = vld [vmem:[#allocation8 + $0x10] sm:$0xff] }
 0x7e3   :  { %v2973_v17 = vpack.c.bf16 %v2095_v28, %v2094_v13 }
 0x7ec   :  { %v3181_v48 = vpop.eup %3180 }
 0x7ed   :  { %v1819_v49 = vmul.f32 %v3181_v48, %v3179_v41 }
 0x7ef   :  { %v1826_v51 = vsel %vm1825_vm6, %v1819_v49, %v3879_v27  ;;  %v2096_v27 = vld [vmem:[#allocation8 + $0x20] sm:$0xff] }
 0x7f0   :  { %1897 = vmatmul.mubr.f32.vlgmr.msra.gmra.mrb[14].mxu0 %v1826_v51  ;;  %1968 = vmatmul.mubr.f32.vlgmr.msra.gmra.mrb[14].mxu1 %v1826_v51  ;;  %v2976_v8 = vpack.c.bf16 %v2097_v7, %v2096_v27 }
 0x7f1   :  { %2947 = vmatpush3.bf16.msra.mxu0 %v2946_v25  ;;  %2331 = vmatprep.mubr.msk.f32.mxu0 %vm3275_vm7, %v3272_v6  ;;  %v1996_v25 = vpop.permute.xlu1 %1995 }
 0x7f2   :  { %2948 = vmatprep.subr.bf16.mxu0 %v3274_v33  ;;  %2366 = vmatprep.mubr.msk.f32.mxu1 %vm3275_vm7, %v3272_v6  ;;  %v2013_v6 = vld [vmem:[%s4012_s5 + $0x70] sm:$0xff]  ;;  %vm1997_vm8 = vcmp.eq.s32.totalorder %v1996_v25, 1 }
 0x7f3   :  { %v2967_v5 = vpack.c.bf16 %v2014_v56, %v2013_v6  ;;  %2971 = vmatpush3.bf16.msra.mxu1 %v2970_v20 }
 0x7f4   :  { %2972 = vmatprep.subr.bf16.mxu1 %v3274_v33 }
 0x7f5   :  { %2950 = vmatpush3.bf16.msra.mxu0 %v2949_v38 }
 0x7f6   :  { %2951 = vmatprep.subr.bf16.mxu0 %v3274_v33 }
 0x7f7   :  { %2974 = vmatpush3.bf16.msra.mxu1 %v2973_v17 }
 0x7f8   :  { %2975 = vmatprep.subr.bf16.mxu1 %v3274_v33 }
 0x7f9   :  { %2953 = vmatpush3.bf16.msra.mxu0 %v2952_v1 }
 0x7fa   :  { %2954 = vmatprep.subr.bf16.mxu0 %v3274_v33 }
 0x7fb   :  { %2977 = vmatpush3.bf16.msra.mxu1 %v2976_v8 }
 0x7fc   :  { %2978 = vmatprep.subr.bf16.mxu1 %v3274_v33 }
 0x7fd   :  { %2956 = vmatpush3.bf16.msra.mxu0 %v2955_v50 }
 0x7fe   :  { %2957 = vmatprep.subr.bf16.mxu0 %v3274_v33 }
 0x7ff   :  { %2980 = vmatpush3.bf16.msra.mxu1 %v2979_v22 }
 0x800   :  { %2981 = vmatprep.subr.bf16.mxu1 %v3274_v33 }
 0x801   :  { %2959 = vmatpush3.bf16.msra.mxu0 %v2958_v58 }
 0x802   :  { %2960 = vmatprep.subr.bf16.mxu0 %v3274_v33 }
 0x803   :  { %2983 = vmatpush3.bf16.msra.mxu1 %v2982_v30 }
 0x804   :  { %2984 = vmatprep.subr.bf16.mxu1 %v3274_v33 }
 0x805   :  { %2962 = vmatpush3.bf16.msra.mxu0 %v2961_v62 }
 0x806   :  { %2963 = vmatprep.subr.bf16.mxu0 %v3274_v33 }
 0x807   :  { %2986 = vmatpush3.bf16.msra.mxu1 %v2985_v42 }
 0x808   :  { %2987 = vmatprep.subr.bf16.mxu1 %v3274_v33 }
 0x809   :  { %2965 = vmatpush3.bf16.msra.mxu0 %v2964_v12 }
 0x80a   :  { %2966 = vmatprep.subr.bf16.mxu0 %v3274_v33 }
 0x80b   :  { %2989 = vmatpush3.bf16.msra.mxu1 %v2988_v47 }
 0x80c   :  { %2990 = vmatprep.subr.bf16.mxu1 %v3274_v33 }
 0x80d   :  { %2968 = vmatpush3.bf16.msra.mxu0 %v2967_v5 }
 0x8c3   :  { %v1898_v53 = vpop.f32.mrb[14].mxu0  ;;  %v1969_v54 = vpop.f32.mrb[14].mxu1 }
 0x8c4   :  { %v3007_v63 = vadd.f32 %v1898_v53, %v3632_v60  ;;  %v1900_v2 = vpop.f32.mrb[15].mxu0  ;;  %v1971_v10 = vpop.f32.mrb[15].mxu1  ;;  %v3023_v31 = vadd.f32 %v1969_v54, %v3641_v26  ;;  %v2106_v26 = vld [vmem:[#allocation8 + $0x70] sm:$0xff] }
 0x8c5   :  { %v3008_v11 = vadd.f32 %v1900_v2, %v3634_v61  ;;  %v2991_v38 = vpack.c.bf16 %v2107_v35, %v2106_v26 }
 0x8c6   :  { %v2259_v21 = vmul.f32 -1.442695, %v3007_v63 }
 0x8c7   :  { %v2260_v24 = vmul.f32 -1.442695, %v3008_v11  ;;  %2992 = vmatpush3.bf16.msra.mxu1 %v2991_v38 }
 0x8c8   :  { %3182 = vpow2.f32 %v2259_v21 }
 0x8c9   :  { %3184 = vpow2.f32 %v2260_v24 }
 0x8ca   :  { %3186 = vtanh.f32 %v3023_v31 }
 0x8d2   :  { %v3183_v32 = vpop.eup %3182 }
 0x8d3   :  { %v3185_v41 = vpop.eup %3184  ;;  %v1979_v48 = vadd.f32 1.0, %v3183_v32 }
 0x8d4   :  { %v1985_v49 = vadd.f32 1.0, %v3185_v41  ;;  %v3187_v51 = vpop.eup %3186 }
 0x8d5   :  { %3188 = vrcp.f32 %v1979_v48 }
 0x8d6   :  { %3190 = vrcp.f32 %v1985_v49 }
 0x8df   :  { %v3189_v52 = vpop.eup %3188 }
 0x8e0   :  { %v3191_v60 = vpop.eup %3190  ;;  %v1990_v19 = vmul.f32 %v3189_v52, %v3187_v51 }
 0x8e1   :  { %v1989_v61 = vmul.f32 %v3191_v60, %v3921_v40 }
 0x8e3   :  { %v1991_v33 = vadd.f32 %v1990_v19, %v1989_v61 }
 0x8e5   :  { %v1998_v34 = vsel %vm1997_vm8, %v1991_v33, %v3921_v40 }
 0x8e6   :  { %2332 = vmatmul.mubr.f32.vlgmr.msra.gmra.mrb[16].mxu0 %v1998_v34 }
 0x9b9   :  { %v2088_v44 = vpop.f32.mrb[16].mxu0 }
 0x9ba   :  { %v2089_v1 = vadd.f32 %v2261_v39, %v2088_v44  ;;  %v2333_v15 = vpop.f32.mrb[17].mxu0 }
 0x9bc   :  { %2367 = vmatmul.mubr.f32.vlgmr.msra.gmra.mrb[16].mxu1 %v2089_v1 }
 0xa8f   :  { %v2181_v50 = vpop.f32.mrb[16].mxu1 }
 0xa90   :  { %v2182_v57 = vadd.f32 %v2262_v45, %v2181_v50  ;;  %v2368_v40 = vpop.f32.mrb[17].mxu1 }
 0xa92   :  { %3192 = vtanh.f32 %v2182_v57 }
 0xa9c   :  { %v3193_v58 = vpop.eup %3192 }
 0xa9d   :  { %v2193_v18 = vmul.f32 %v3193_v58, %v2263_v0 }
 0xa9f   :  { %2194 = vadd.xlane.f32.xlu0 %v2193_v18 }
 0xb2c   :  { %v2195_v62 = vpop.xlane.xlu0 %2194 }
 0xb2d   :  { %v2203_v3 = vadd.f32 %v2264_v55, %v2195_v62 }
 0xb2f   :  { %2205 = vst.msk [vmem:[%s4018_s11] sm:$0xff] %vm2204_vm9, %v2203_v3 }
 0xb30   :  { %2210 = vsyncpa [#allocation5], 1 }
 0xb31   :  { %2211 = vsyncpa [#allocation7], 1 }

</bundles_post_ra>
